<compile_context>
chip_gen: v7x
topology: tpu7x:2x2x1
jax: 0.10.0
libtpu: 0.0.40
codegen_flags: <defaults>
</compile_context>

<pallas_src>
import functools
import math

import jax
import jax.numpy as jnp
from jax.experimental import pallas as pl
from jax.experimental.pallas import tpu as pltpu


# --------------------------- packed-parameter layout ---------------------------

def _pad128(n):
    return ((n + 127) // 128) * 128


def _slab_layout(segs):
    """Lane-aligned (multiple-of-128) segment offsets: {name: (offset, real_width)}, total."""
    off, cur = {}, 0
    for name, n in segs:
        off[name] = (cur, n)
        cur += _pad128(n)
    return off, cur


def _weight_slab_layout(E, FF, hidden):
    # every matrix here has E input rows; concatenated along the lane (output) axis
    return _slab_layout((("l1", FF), ("enc_in", 3 * E), ("enc_out", E),
                         ("attn_in", 3 * E), ("attn_out", E), ("agg", hidden)))


def _bias_slab_layout(E, FF, hidden, out_dim):
    return _slab_layout((("enc_in_b", 3 * E), ("enc_out_b", E),
                         ("attn_in_b", 3 * E), ("attn_out_b", E),
                         ("l1_b", FF), ("l2_b", E),
                         ("n1_g", E), ("n1_b", E), ("n2_g", E), ("n2_b", E),
                         ("agg_b", hidden), ("out_b", out_dim)))


def _pack_slab(parts, layout, total, rows, dtype):
    slab = jnp.zeros((rows, total), dtype)
    for name, (o, n) in layout.items():
        slab = slab.at[:, o:o + n].set(parts[name].astype(dtype))
    return slab


def pack_params(p):
    """Pack all parameters into 4 arrays (2 bf16 weight slabs, 1 f32 bias slab, tiny f32 out_w).
    Do this ONCE; the fused kernel then needs only 4 parameter DMAs + 1 input DMA."""
    f32, bf16 = jnp.float32, jnp.bfloat16
    E = p["enc_attn"]["in_proj_w"].shape[0]
    FF = p["linear1_w"].shape[1]
    hidden = p["agg_w"].shape[1]
    out_dim = p["out_w"].shape[1]

    w_off, w_tot = _weight_slab_layout(E, FF, hidden)
    w_parts = {
        "l1": p["linear1_w"],
        "enc_in": p["enc_attn"]["in_proj_w"], "enc_out": p["enc_attn"]["out_proj_w"],
        "attn_in": p["attn"]["in_proj_w"], "attn_out": p["attn"]["out_proj_w"],
        "agg": p["agg_w"],
    }
    b_off, b_tot = _bias_slab_layout(E, FF, hidden, out_dim)
    b_parts = {
        "enc_in_b": p["enc_attn"]["in_proj_b"], "enc_out_b": p["enc_attn"]["out_proj_b"],
        "attn_in_b": p["attn"]["in_proj_b"], "attn_out_b": p["attn"]["out_proj_b"],
        "l1_b": p["linear1_b"], "l2_b": p["linear2_b"],
        "n1_g": p["norm1_g"], "n1_b": p["norm1_b"],
        "n2_g": p["norm2_g"], "n2_b": p["norm2_b"],
        "agg_b": p["agg_b"], "out_b": p["out_b"],
    }
    return {
        "w_slab": _pack_slab(w_parts, w_off, w_tot, E, bf16),   # (E, w_tot)   bf16
        "l2_w": p["linear2_w"].astype(bf16),                    # (FF, E)      bf16
        "out_w": p["out_w"].astype(f32),                        # (hidden,out) f32 (tiny/exact)
        "b_slab": _pack_slab(b_parts, b_off, b_tot, 1, f32),    # (1, b_tot)   f32
    }


# ------------------------------- fused kernel ----------------------------------

def _fused_doc2vec_kernel(x_ref, w_ref, l2w_ref, outw_ref, b_ref, o_ref,
                          *, E, H, S, B, eps, w_off, b_off):
    f32, bf16 = jnp.float32, jnp.bfloat16
    dh = E // H
    scale = 1.0 / math.sqrt(dh)
    BS = S * B

    def wsl(name):                      # bf16 (E, n) slice of the weight slab
        off, n = w_off[name]
        return w_ref[:, off:off + n]

    def bsl(name):                      # f32 (1, n) slice of the bias / LayerNorm slab
        off, n = b_off[name]
        return b_ref[:, off:off + n]

    # same-batch additive mask and per-batch mean-pool matrix built in-kernel
    # (removes 2 input DMAs and a wrapper-side XLA fusion; hides under MXU/DMA slack)
    row_b = jax.lax.broadcasted_iota(jnp.int32, (BS, BS), 0) % B
    col_b = jax.lax.broadcasted_iota(jnp.int32, (BS, BS), 1) % B
    mask_bias = jnp.where(row_b == col_b, 0.0, -1e30).astype(f32)        # (BS, BS)
    pool_b = jax.lax.broadcasted_iota(jnp.int32, (B, BS), 0)
    pool_r = jax.lax.broadcasted_iota(jnp.int32, (B, BS), 1) % B
    pool = jnp.where(pool_b == pool_r, 1.0 / S, 0.0).astype(f32)         # (B, BS)

    def layer_norm(z, g, b):
        mu = jnp.mean(z, axis=-1, keepdims=True)
        var = jnp.mean(jnp.square(z - mu), axis=-1, keepdims=True)
        return (z - mu) * jax.lax.rsqrt(var + eps) * g + b

    def mha(h_in, in_w, in_b, out_w, out_b):
        # bf16 MXU operands, f32 accumulation; softmax / mask stay f32
        qkv = jnp.dot(h_in.astype(bf16), in_w,
                      preferred_element_type=f32) + in_b                 # (BS, 3E) f32
        acc = None
        for h in range(H):                                               # static unroll, H small
            q = (qkv[:, h * dh:(h + 1) * dh] * scale).astype(bf16)       # (BS, dh)
            k = qkv[:, E + h * dh:E + (h + 1) * dh].astype(bf16)
            v = qkv[:, 2 * E + h * dh:2 * E + (h + 1) * dh].astype(bf16)
            s = jnp.einsum("sd,td->st", q, k,
                           preferred_element_type=f32) + mask_bias       # f32 scores
            m = jnp.max(s, axis=-1, keepdims=True)
            p = jnp.exp(s - m)
            p = p * pl.reciprocal(jnp.sum(p, axis=-1, keepdims=True), approx=True)
            o_h = jnp.dot(p.astype(bf16), v, preferred_element_type=f32)  # (BS, dh)
            # fold this head straight into the output projection (no lane concat)
            contrib = jnp.dot(o_h.astype(bf16), out_w[h * dh:(h + 1) * dh, :],
                              preferred_element_type=f32)                # (BS, E)
            acc = contrib if acc is None else acc + contrib
        return acc + out_b

    x = x_ref[...].astype(f32)                                           # (BS, E)

    # --- TransformerEncoderLayer (post-norm, ReLU FFN; dropout = identity/eval) ---
    sa = mha(x, wsl("enc_in"), bsl("enc_in_b"), wsl("enc_out"), bsl("enc_out_b"))
    h1 = layer_norm(x + sa, bsl("n1_g"), bsl("n1_b"))

    # TODO(synk): on v6e/v7x the FFN hidden could be kept bf16 end-to-end; f32 accumulation is
    # kept so the very same kernel is also the native (no-bf16-VALU) path on v5e.
    ff = jnp.dot(h1.astype(bf16), wsl("l1"), preferred_element_type=f32) + bsl("l1_b")
    ff = jnp.maximum(ff, 0.0)
    ff = jnp.dot(ff.astype(bf16), l2w_ref[...], preferred_element_type=f32) + bsl("l2_b")
    h2 = layer_norm(h1 + ff, bsl("n2_g"), bsl("n2_b"))

    # --- standalone self.attention(enc, enc, enc) ---
    attn2 = mha(h2, wsl("attn_in"), bsl("attn_in_b"), wsl("attn_out"), bsl("attn_out_b"))

    # --- mean over sequence (pooling matmul) -> linear_aggregate -> linear_output ---
    pooled = jnp.dot(pool, attn2, preferred_element_type=f32)            # (B, E)
    agg = jnp.dot(pooled.astype(bf16), wsl("agg"),
                  preferred_element_type=f32) + bsl("agg_b")             # (B, hidden)
    out = jnp.dot(agg, outw_ref[...], preferred_element_type=f32) + bsl("out_b")
    # TODO(synk): the (B, out_dim) store is the one remaining masked sub-vreg store; pad the
    # output to a lane-dense shape only if the caller tolerates padding.
    o_ref[...] = out.astype(o_ref.dtype)


# ------------------------------ model wrapper -----------------------------------

def attention_doc2vec_forward(x, params, num_heads, eps=1e-5):
    """x: (S, B, E) f32 (PyTorch batch_first=False) or (N, S, B, E) for N documents.
    `params` is the packed dict from pack_params() (raw init_params dict also accepted).
    Returns (B, output) or (N, B, output)."""
    if "w_slab" not in params:
        params = pack_params(params)

    single = (x.ndim == 3)
    if single:
        x = x[None]
    N, S, B, E = x.shape
    BS = S * B
    x2 = x.reshape(N, BS, E)                     # free reshape: row r = s*B + b

    w_slab, l2_w = params["w_slab"], params["l2_w"]
    out_w, b_slab = params["out_w"], params["b_slab"]
    FF = l2_w.shape[0]
    hidden, out_dim = out_w.shape
    w_off, w_tot = _weight_slab_layout(E, FF, hidden)
    b_off, b_tot = _bias_slab_layout(E, FF, hidden, out_dim)
    assert w_slab.shape == (E, w_tot) and b_slab.shape == (1, b_tot)

    kernel = functools.partial(_fused_doc2vec_kernel, E=E, H=num_heads, S=S, B=B,
                               eps=eps, w_off=w_off, b_off=b_off)

    out = pl.pallas_call(
        kernel,
        out_shape=jax.ShapeDtypeStruct((N, B, out_dim), jnp.float32),
        grid=(N,),
        in_specs=[
            pl.BlockSpec((None, BS, E), lambda n: (n, 0, 0)),          # per-document input
            pl.BlockSpec((E, w_tot), lambda n: (0, 0)),                # weights stay VMEM-resident
            pl.BlockSpec((FF, E), lambda n: (0, 0)),
            pl.BlockSpec((hidden, out_dim), lambda n: (0, 0)),
            pl.BlockSpec((1, b_tot), lambda n: (0, 0)),
        ],
        out_specs=pl.BlockSpec((None, B, out_dim), lambda n: (n, 0, 0)),
        compiler_params=pltpu.CompilerParams(
            dimension_semantics=("parallel",)),                        # megacore split on v7x
    )(x2, w_slab, l2_w, out_w, b_slab)
    return out[0] if single else out


# --------------------------- parameter init + reference -------------------------

def init_params(key, input_size, hidden_size, output_size, ff_dim=2048, scale=0.05):
    """All f32; weights stored (in, out) (transposed vs. PyTorch); biases/LN params as (1, N)."""
    ks = jax.random.split(key, 16)
    w = lambda k, shape: scale * jax.random.normal(k, shape, jnp.float32)
    f32 = jnp.float32
    return {
        "enc_attn": {
            "in_proj_w": w(ks[0], (input_size, 3 * input_size)),
            "in_proj_b": w(ks[1], (1, 3 * input_size)),
            "out_proj_w": w(ks[2], (input_size, input_size)),
            "out_proj_b": w(ks[3], (1, input_size)),
        },
        "linear1_w": w(ks[4], (input_size, ff_dim)),
        "linear1_b": w(ks[5], (1, ff_dim)),
        "linear2_w": w(ks[6], (ff_dim, input_size)),
        "linear2_b": w(ks[7], (1, input_size)),
        "norm1_g": jnp.ones((1, input_size), f32),
        "norm1_b": jnp.zeros((1, input_size), f32),
        "norm2_g": jnp.ones((1, input_size), f32),
        "norm2_b": jnp.zeros((1, input_size), f32),
        "attn": {
            "in_proj_w": w(ks[8], (input_size, 3 * input_size)),
            "in_proj_b": w(ks[9], (1, 3 * input_size)),
            "out_proj_w": w(ks[10], (input_size, input_size)),
            "out_proj_b": w(ks[11], (1, input_size)),
        },
        "agg_w": w(ks[12], (input_size, hidden_size)),
        "agg_b": w(ks[13], (1, hidden_size)),
        "out_w": w(ks[14], (hidden_size, output_size)),
        "out_b": w(ks[15], (1, output_size)),
    }


def reference_forward(x, p, num_heads, eps=1e-5):
    """Pure-JAX f32 reference mirroring the PyTorch module (eval mode)."""
    S, B, E = x.shape
    H = num_heads
    dh = E // H

    def mha(h, wi, bi, wo, bo):
        qkv = h @ wi + bi
        q, k, v = jnp.split(qkv, 3, axis=-1)
        heads = lambda t: t.reshape(S, B, H, dh).transpose(1, 2, 0, 3)   # (B,H,S,dh)
        q, k, v = heads(q), heads(k), heads(v)
        s = jnp.einsum("bhsd,bhtd->bhst", q, k) / math.sqrt(dh)
        a = jax.nn.softmax(s, axis=-1)
        o = jnp.einsum("bhst,bhtd->bhsd", a, v).transpose(2, 0, 1, 3).reshape(S, B, E)
        return o @ wo + bo

    def ln(z, g, b):
        mu = z.mean(-1, keepdims=True)
        var = ((z - mu) ** 2).mean(-1, keepdims=True)
        return (z - mu) / jnp.sqrt(var + eps) * g + b

    sa = mha(x, p["enc_attn"]["in_proj_w"], p["enc_attn"]["in_proj_b"],
             p["enc_attn"]["out_proj_w"], p["enc_attn"]["out_proj_b"])
    h1 = ln(x + sa, p["norm1_g"], p["norm1_b"])
    ff = jnp.maximum(h1 @ p["linear1_w"] + p["linear1_b"], 0.0)
    ff = ff @ p["linear2_w"] + p["linear2_b"]
    h2 = ln(h1 + ff, p["norm2_g"], p["norm2_b"])
    a2 = mha(h2, p["attn"]["in_proj_w"], p["attn"]["in_proj_b"],
             p["attn"]["out_proj_w"], p["attn"]["out_proj_b"])
    agg = a2.mean(axis=0) @ p["agg_w"] + p["agg_b"]
    return agg @ p["out_w"] + p["out_b"]


if __name__ == "__main__":
    input_size, hidden_size, num_heads, output_size = 32, 16, 4, 8
    S, B = 8, 2

    key = jax.random.PRNGKey(0)
    k_x, k_p = jax.random.split(key)
    x = jax.random.normal(k_x, (S, B, input_size), jnp.float32)
    params = init_params(k_p, input_size, hidden_size, output_size)
    packed = pack_params(params)            # one-time packing: 4 parameter arrays total

    fwd = jax.jit(functools.partial(attention_doc2vec_forward, num_heads=num_heads))

    # single document (matches the PyTorch module's forward)
    out = jax.block_until_ready(fwd(x, packed))
    assert out.shape == (B, output_size), out.shape
    assert bool(jnp.all(jnp.isfinite(out)))

    # numerical check vs. f32 reference (bf16 MXU operands + approx reciprocal => loose tol)
    ref = reference_forward(x, params, num_heads)
    err = float(jnp.max(jnp.abs(out - ref)))
    assert err < 5e-3, f"max abs err {err}"

    # multi-document path: grid=(N,), weights VMEM-resident, documents split across TCs on v7x
    xs = jnp.stack([x, x * 0.5, -x])
    outs = jax.block_until_ready(fwd(xs, packed))
    assert outs.shape == (3, B, output_size)
    assert bool(jnp.all(jnp.isfinite(outs)))
    assert float(jnp.max(jnp.abs(outs[0] - out))) < 1e-5

    print("KERNEL_OK")
</pallas_src>

<mosaic_0001>
module attributes {stable_mosaic.version = 11 : i64} {
  func.func @_fused_doc2vec_kernel(%arg0: i32, %arg1: memref<1x16x32xf32, #tpu.memory_space<vmem>>, %arg2: memref<32x2688xbf16, #tpu.memory_space<vmem>>, %arg3: memref<2048x32xbf16, #tpu.memory_space<vmem>>, %arg4: memref<16x8xf32, #tpu.memory_space<vmem>>, %arg5: memref<1x3456xf32, #tpu.memory_space<vmem>>, %arg6: memref<1x2x8xf32, #tpu.memory_space<vmem>>) attributes {dimension_semantics = [#tpu.dimension_semantics<parallel>], iteration_bounds = array<i64: 1>, scalar_prefetch = 0 : i64, scratch_operands = 0 : i64, tpu.core_type = #tpu.core_type<tc>, window_params = [{transform_indices = @transform_0, window_bounds = array<i64: 1, 16, 32>}, {pipeline_mode = #tpu.pipeline_mode<synchronous>, transform_indices = @transform_1, window_bounds = array<i64: 32, 2688>}, {pipeline_mode = #tpu.pipeline_mode<synchronous>, transform_indices = @transform_2, window_bounds = array<i64: 2048, 32>}, {pipeline_mode = #tpu.pipeline_mode<synchronous>, transform_indices = @transform_3, window_bounds = array<i64: 16, 8>}, {pipeline_mode = #tpu.pipeline_mode<synchronous>, transform_indices = @transform_4, window_bounds = array<i64: 1, 3456>}, {transform_indices = @transform_5, window_bounds = array<i64: 1, 2, 8>}]} {
    %0 = tpu.iota {dimensions = array<i32: 0>} : vector<16x16xi32>
    %c2_i32 = arith.constant 2 : i32
    %c0_i32 = arith.constant 0 : i32
    %1 = arith.cmpi eq, %c2_i32, %c0_i32 : i32
    %c1_i32 = arith.constant 1 : i32
    %2 = arith.select %1, %c1_i32, %c2_i32 : i32
    %3 = vector.broadcast %2 : i32 to vector<16x16xi32>
    %4 = arith.remsi %0, %3 : vector<16x16xi32>
    %c0_i32_0 = arith.constant 0 : i32
    %5 = vector.broadcast %c0_i32_0 : i32 to vector<16x16xi32>
    %6 = arith.cmpi ne, %4, %5 : vector<16x16xi32>
    %c0_i32_1 = arith.constant 0 : i32
    %7 = vector.broadcast %c0_i32_1 : i32 to vector<16x16xi32>
    %8 = arith.cmpi slt, %4, %7 : vector<16x16xi32>
    %c0_i32_2 = arith.constant 0 : i32
    %9 = arith.cmpi slt, %2, %c0_i32_2 : i32
    %10 = vector.broadcast %9 : i1 to vector<16x16xi1>
    %11 = vector.broadcast %10 : vector<16x16xi1> to vector<16x16xi1>
    %12 = arith.xori %8, %11 : vector<16x16xi1>
    %13 = arith.andi %12, %6 : vector<16x16xi1>
    %14 = vector.broadcast %2 : i32 to vector<16x16xi32>
    %15 = arith.addi %4, %14 : vector<16x16xi32>
    %16 = arith.select %13, %15, %4 : vector<16x16xi1>, vector<16x16xi32>
    %17 = tpu.iota {dimensions = array<i32: 1>} : vector<16x16xi32>
    %c2_i32_3 = arith.constant 2 : i32
    %c0_i32_4 = arith.constant 0 : i32
    %18 = arith.cmpi eq, %c2_i32_3, %c0_i32_4 : i32
    %c1_i32_5 = arith.constant 1 : i32
    %19 = arith.select %18, %c1_i32_5, %c2_i32_3 : i32
    %20 = vector.broadcast %19 : i32 to vector<16x16xi32>
    %21 = arith.remsi %17, %20 : vector<16x16xi32>
    %c0_i32_6 = arith.constant 0 : i32
    %22 = vector.broadcast %c0_i32_6 : i32 to vector<16x16xi32>
    %23 = arith.cmpi ne, %21, %22 : vector<16x16xi32>
    %c0_i32_7 = arith.constant 0 : i32
    %24 = vector.broadcast %c0_i32_7 : i32 to vector<16x16xi32>
    %25 = arith.cmpi slt, %21, %24 : vector<16x16xi32>
    %c0_i32_8 = arith.constant 0 : i32
    %26 = arith.cmpi slt, %19, %c0_i32_8 : i32
    %27 = vector.broadcast %26 : i1 to vector<16x16xi1>
    %28 = vector.broadcast %27 : vector<16x16xi1> to vector<16x16xi1>
    %29 = arith.xori %25, %28 : vector<16x16xi1>
    %30 = arith.andi %29, %23 : vector<16x16xi1>
    %31 = vector.broadcast %19 : i32 to vector<16x16xi32>
    %32 = arith.addi %21, %31 : vector<16x16xi32>
    %33 = arith.select %30, %32, %21 : vector<16x16xi1>, vector<16x16xi32>
    %34 = arith.cmpi eq, %16, %33 : vector<16x16xi32>
    %cst = arith.constant 0.000000e+00 : f32
    %cst_9 = arith.constant -1.000000e+30 : f32
    %35 = vector.broadcast %cst : f32 to vector<16x16xf32>
    %36 = vector.broadcast %cst_9 : f32 to vector<16x16xf32>
    %37 = arith.select %34, %35, %36 : vector<16x16xi1>, vector<16x16xf32>
    %38 = tpu.iota {dimensions = array<i32: 0>} : vector<2x16xi32>
    %39 = tpu.iota {dimensions = array<i32: 1>} : vector<2x16xi32>
    %c2_i32_10 = arith.constant 2 : i32
    %c0_i32_11 = arith.constant 0 : i32
    %40 = arith.cmpi eq, %c2_i32_10, %c0_i32_11 : i32
    %c1_i32_12 = arith.constant 1 : i32
    %41 = arith.select %40, %c1_i32_12, %c2_i32_10 : i32
    %42 = vector.broadcast %41 : i32 to vector<2x16xi32>
    %43 = arith.remsi %39, %42 : vector<2x16xi32>
    %c0_i32_13 = arith.constant 0 : i32
    %44 = vector.broadcast %c0_i32_13 : i32 to vector<2x16xi32>
    %45 = arith.cmpi ne, %43, %44 : vector<2x16xi32>
    %c0_i32_14 = arith.constant 0 : i32
    %46 = vector.broadcast %c0_i32_14 : i32 to vector<2x16xi32>
    %47 = arith.cmpi slt, %43, %46 : vector<2x16xi32>
    %c0_i32_15 = arith.constant 0 : i32
    %48 = arith.cmpi slt, %41, %c0_i32_15 : i32
    %49 = vector.broadcast %48 : i1 to vector<2x16xi1>
    %50 = vector.broadcast %49 : vector<2x16xi1> to vector<2x16xi1>
    %51 = arith.xori %47, %50 : vector<2x16xi1>
    %52 = arith.andi %51, %45 : vector<2x16xi1>
    %53 = vector.broadcast %41 : i32 to vector<2x16xi32>
    %54 = arith.addi %43, %53 : vector<2x16xi32>
    %55 = arith.select %52, %54, %43 : vector<2x16xi1>, vector<2x16xi32>
    %56 = arith.cmpi eq, %38, %55 : vector<2x16xi32>
    %cst_16 = arith.constant 1.250000e-01 : f32
    %cst_17 = arith.constant 0.000000e+00 : f32
    %57 = vector.broadcast %cst_16 : f32 to vector<2x16xf32>
    %58 = vector.broadcast %cst_17 : f32 to vector<2x16xf32>
    %59 = arith.select %56, %57, %58 : vector<2x16xi1>, vector<2x16xf32>
    %c0 = arith.constant 0 : index
    %c0_18 = arith.constant 0 : index
    %c0_19 = arith.constant 0 : index
    %60 = vector.load %arg1[%c0, %c0_18, %c0_19] : memref<1x16x32xf32, #tpu.memory_space<vmem>>, vector<1x16x32xf32>
    %61 = vector.shape_cast %60 : vector<1x16x32xf32> to vector<16x32xf32>
    %c0_20 = arith.constant 0 : index
    %c2048 = arith.constant 2048 : index
    %62 = vector.load %arg2[%c0_20, %c2048] : memref<32x2688xbf16, #tpu.memory_space<vmem>>, vector<32x96xbf16>
    %c0_21 = arith.constant 0 : index
    %c0_22 = arith.constant 0 : index
    %63 = vector.load %arg5[%c0_21, %c0_22] : memref<1x3456xf32, #tpu.memory_space<vmem>>, vector<1x96xf32>
    %c0_23 = arith.constant 0 : index
    %c2176 = arith.constant 2176 : index
    %64 = vector.load %arg2[%c0_23, %c2176] : memref<32x2688xbf16, #tpu.memory_space<vmem>>, vector<32x32xbf16>
    %c0_24 = arith.constant 0 : index
    %c128 = arith.constant 128 : index
    %65 = vector.load %arg5[%c0_24, %c128] : memref<1x3456xf32, #tpu.memory_space<vmem>>, vector<1x32xf32>
    %66 = arith.truncf %61 : vector<16x32xf32> to vector<16x32xbf16>
    %cst_25 = arith.constant dense<0.000000e+00> : vector<16x96xf32>
    %67 = tpu.matmul %66, %62, %cst_25 {dimension_numbers = #tpu.dot_dimension_numbers<[1], [0], [0], [1], [0, 0, 1, 1], [], []>} : vector<16x32xbf16>, vector<32x96xbf16>, vector<16x96xf32> -> vector<16x96xf32>
    %68 = vector.broadcast %63 : vector<1x96xf32> to vector<16x96xf32>
    %69 = arith.addf %67, %68 : vector<16x96xf32>
    %70 = vector.extract_strided_slice %69 {offsets = [0, 0], sizes = [16, 8], strides = [1, 1]} : vector<16x96xf32> to vector<16x8xf32>
    %cst_26 = arith.constant 0.353553385 : f32
    %71 = vector.broadcast %cst_26 : f32 to vector<16x8xf32>
    %72 = arith.mulf %70, %71 : vector<16x8xf32>
    %73 = arith.truncf %72 : vector<16x8xf32> to vector<16x8xbf16>
    %74 = vector.extract_strided_slice %69 {offsets = [0, 32], sizes = [16, 8], strides = [1, 1]} : vector<16x96xf32> to vector<16x8xf32>
    %75 = arith.truncf %74 : vector<16x8xf32> to vector<16x8xbf16>
    %76 = vector.extract_strided_slice %69 {offsets = [0, 64], sizes = [16, 8], strides = [1, 1]} : vector<16x96xf32> to vector<16x8xf32>
    %77 = arith.truncf %76 : vector<16x8xf32> to vector<16x8xbf16>
    "tpu.trace_start"() <{level = 10 : i32, message = "sd,td->st"}> : () -> ()
    %cst_27 = arith.constant dense<0.000000e+00> : vector<16x16xf32>
    %78 = tpu.matmul %73, %75, %cst_27 {dimension_numbers = #tpu.dot_dimension_numbers<[1], [1], [0], [0], [0, 0, 1, 0], [], []>} : vector<16x8xbf16>, vector<16x8xbf16>, vector<16x16xf32> -> vector<16x16xf32>
    "tpu.trace_stop"() : () -> ()
    %79 = arith.addf %78, %37 : vector<16x16xf32>
    %cst_28 = arith.constant dense<0xFF800000> : vector<16xf32>
    %80 = vector.multi_reduction <maximumf>, %79, %cst_28 [1] : vector<16x16xf32> to vector<16xf32>
    %81 = vector.shape_cast %80 : vector<16xf32> to vector<16x1xf32>
    %82 = vector.broadcast %81 : vector<16x1xf32> to vector<16x16xf32>
    %83 = arith.subf %79, %82 : vector<16x16xf32>
    %84 = math.exp %83 : vector<16x16xf32>
    %cst_29 = arith.constant dense<0.000000e+00> : vector<16xf32>
    %85 = vector.multi_reduction <add>, %84, %cst_29 [1] : vector<16x16xf32> to vector<16xf32>
    %86 = vector.shape_cast %85 : vector<16xf32> to vector<16x1xf32>
    %87 = tpu.reciprocal %86 {approx = true} : vector<16x1xf32> -> vector<16x1xf32>
    %88 = vector.broadcast %87 : vector<16x1xf32> to vector<16x16xf32>
    %89 = arith.mulf %84, %88 : vector<16x16xf32>
    %90 = arith.truncf %89 : vector<16x16xf32> to vector<16x16xbf16>
    %cst_30 = arith.constant dense<0.000000e+00> : vector<16x8xf32>
    %91 = tpu.matmul %90, %77, %cst_30 {dimension_numbers = #tpu.dot_dimension_numbers<[1], [0], [0], [1], [0, 0, 1, 1], [], []>} : vector<16x16xbf16>, vector<16x8xbf16>, vector<16x8xf32> -> vector<16x8xf32>
    %92 = arith.truncf %91 : vector<16x8xf32> to vector<16x8xbf16>
    %93 = vector.extract_strided_slice %64 {offsets = [0, 0], sizes = [8, 32], strides = [1, 1]} : vector<32x32xbf16> to vector<8x32xbf16>
    %cst_31 = arith.constant dense<0.000000e+00> : vector<16x32xf32>
    %94 = tpu.matmul %92, %93, %cst_31 {dimension_numbers = #tpu.dot_dimension_numbers<[1], [0], [0], [1], [0, 0, 1, 1], [], []>} : vector<16x8xbf16>, vector<8x32xbf16>, vector<16x32xf32> -> vector<16x32xf32>
    %95 = vector.extract_strided_slice %69 {offsets = [0, 8], sizes = [16, 8], strides = [1, 1]} : vector<16x96xf32> to vector<16x8xf32>
    %cst_32 = arith.constant 0.353553385 : f32
    %96 = vector.broadcast %cst_32 : f32 to vector<16x8xf32>
    %97 = arith.mulf %95, %96 : vector<16x8xf32>
    %98 = arith.truncf %97 : vector<16x8xf32> to vector<16x8xbf16>
    %99 = vector.extract_strided_slice %69 {offsets = [0, 40], sizes = [16, 8], strides = [1, 1]} : vector<16x96xf32> to vector<16x8xf32>
    %100 = arith.truncf %99 : vector<16x8xf32> to vector<16x8xbf16>
    %101 = vector.extract_strided_slice %69 {offsets = [0, 72], sizes = [16, 8], strides = [1, 1]} : vector<16x96xf32> to vector<16x8xf32>
    %102 = arith.truncf %101 : vector<16x8xf32> to vector<16x8xbf16>
    "tpu.trace_start"() <{level = 10 : i32, message = "sd,td->st"}> : () -> ()
    %cst_33 = arith.constant dense<0.000000e+00> : vector<16x16xf32>
    %103 = tpu.matmul %98, %100, %cst_33 {dimension_numbers = #tpu.dot_dimension_numbers<[1], [1], [0], [0], [0, 0, 1, 0], [], []>} : vector<16x8xbf16>, vector<16x8xbf16>, vector<16x16xf32> -> vector<16x16xf32>
    "tpu.trace_stop"() : () -> ()
    %104 = arith.addf %103, %37 : vector<16x16xf32>
    %cst_34 = arith.constant dense<0xFF800000> : vector<16xf32>
    %105 = vector.multi_reduction <maximumf>, %104, %cst_34 [1] : vector<16x16xf32> to vector<16xf32>
    %106 = vector.shape_cast %105 : vector<16xf32> to vector<16x1xf32>
    %107 = vector.broadcast %106 : vector<16x1xf32> to vector<16x16xf32>
    %108 = arith.subf %104, %107 : vector<16x16xf32>
    %109 = math.exp %108 : vector<16x16xf32>
    %cst_35 = arith.constant dense<0.000000e+00> : vector<16xf32>
    %110 = vector.multi_reduction <add>, %109, %cst_35 [1] : vector<16x16xf32> to vector<16xf32>
    %111 = vector.shape_cast %110 : vector<16xf32> to vector<16x1xf32>
    %112 = tpu.reciprocal %111 {approx = true} : vector<16x1xf32> -> vector<16x1xf32>
    %113 = vector.broadcast %112 : vector<16x1xf32> to vector<16x16xf32>
    %114 = arith.mulf %109, %113 : vector<16x16xf32>
    %115 = arith.truncf %114 : vector<16x16xf32> to vector<16x16xbf16>
    %cst_36 = arith.constant dense<0.000000e+00> : vector<16x8xf32>
    %116 = tpu.matmul %115, %102, %cst_36 {dimension_numbers = #tpu.dot_dimension_numbers<[1], [0], [0], [1], [0, 0, 1, 1], [], []>} : vector<16x16xbf16>, vector<16x8xbf16>, vector<16x8xf32> -> vector<16x8xf32>
    %117 = arith.truncf %116 : vector<16x8xf32> to vector<16x8xbf16>
    %118 = vector.extract_strided_slice %64 {offsets = [8, 0], sizes = [8, 32], strides = [1, 1]} : vector<32x32xbf16> to vector<8x32xbf16>
    %cst_37 = arith.constant dense<0.000000e+00> : vector<16x32xf32>
    %119 = tpu.matmul %117, %118, %cst_37 {dimension_numbers = #tpu.dot_dimension_numbers<[1], [0], [0], [1], [0, 0, 1, 1], [], []>} : vector<16x8xbf16>, vector<8x32xbf16>, vector<16x32xf32> -> vector<16x32xf32>
    %120 = arith.addf %94, %119 : vector<16x32xf32>
    %121 = vector.extract_strided_slice %69 {offsets = [0, 16], sizes = [16, 8], strides = [1, 1]} : vector<16x96xf32> to vector<16x8xf32>
    %cst_38 = arith.constant 0.353553385 : f32
    %122 = vector.broadcast %cst_38 : f32 to vector<16x8xf32>
    %123 = arith.mulf %121, %122 : vector<16x8xf32>
    %124 = arith.truncf %123 : vector<16x8xf32> to vector<16x8xbf16>
    %125 = vector.extract_strided_slice %69 {offsets = [0, 48], sizes = [16, 8], strides = [1, 1]} : vector<16x96xf32> to vector<16x8xf32>
    %126 = arith.truncf %125 : vector<16x8xf32> to vector<16x8xbf16>
    %127 = vector.extract_strided_slice %69 {offsets = [0, 80], sizes = [16, 8], strides = [1, 1]} : vector<16x96xf32> to vector<16x8xf32>
    %128 = arith.truncf %127 : vector<16x8xf32> to vector<16x8xbf16>
    "tpu.trace_start"() <{level = 10 : i32, message = "sd,td->st"}> : () -> ()
    %cst_39 = arith.constant dense<0.000000e+00> : vector<16x16xf32>
    %129 = tpu.matmul %124, %126, %cst_39 {dimension_numbers = #tpu.dot_dimension_numbers<[1], [1], [0], [0], [0, 0, 1, 0], [], []>} : vector<16x8xbf16>, vector<16x8xbf16>, vector<16x16xf32> -> vector<16x16xf32>
    "tpu.trace_stop"() : () -> ()
    %130 = arith.addf %129, %37 : vector<16x16xf32>
    %cst_40 = arith.constant dense<0xFF800000> : vector<16xf32>
    %131 = vector.multi_reduction <maximumf>, %130, %cst_40 [1] : vector<16x16xf32> to vector<16xf32>
    %132 = vector.shape_cast %131 : vector<16xf32> to vector<16x1xf32>
    %133 = vector.broadcast %132 : vector<16x1xf32> to vector<16x16xf32>
    %134 = arith.subf %130, %133 : vector<16x16xf32>
    %135 = math.exp %134 : vector<16x16xf32>
    %cst_41 = arith.constant dense<0.000000e+00> : vector<16xf32>
    %136 = vector.multi_reduction <add>, %135, %cst_41 [1] : vector<16x16xf32> to vector<16xf32>
    %137 = vector.shape_cast %136 : vector<16xf32> to vector<16x1xf32>
    %138 = tpu.reciprocal %137 {approx = true} : vector<16x1xf32> -> vector<16x1xf32>
    %139 = vector.broadcast %138 : vector<16x1xf32> to vector<16x16xf32>
    %140 = arith.mulf %135, %139 : vector<16x16xf32>
    %141 = arith.truncf %140 : vector<16x16xf32> to vector<16x16xbf16>
    %cst_42 = arith.constant dense<0.000000e+00> : vector<16x8xf32>
    %142 = tpu.matmul %141, %128, %cst_42 {dimension_numbers = #tpu.dot_dimension_numbers<[1], [0], [0], [1], [0, 0, 1, 1], [], []>} : vector<16x16xbf16>, vector<16x8xbf16>, vector<16x8xf32> -> vector<16x8xf32>
    %143 = arith.truncf %142 : vector<16x8xf32> to vector<16x8xbf16>
    %144 = vector.extract_strided_slice %64 {offsets = [16, 0], sizes = [8, 32], strides = [1, 1]} : vector<32x32xbf16> to vector<8x32xbf16>
    %cst_43 = arith.constant dense<0.000000e+00> : vector<16x32xf32>
    %145 = tpu.matmul %143, %144, %cst_43 {dimension_numbers = #tpu.dot_dimension_numbers<[1], [0], [0], [1], [0, 0, 1, 1], [], []>} : vector<16x8xbf16>, vector<8x32xbf16>, vector<16x32xf32> -> vector<16x32xf32>
    %146 = arith.addf %120, %145 : vector<16x32xf32>
    %147 = vector.extract_strided_slice %69 {offsets = [0, 24], sizes = [16, 8], strides = [1, 1]} : vector<16x96xf32> to vector<16x8xf32>
    %cst_44 = arith.constant 0.353553385 : f32
    %148 = vector.broadcast %cst_44 : f32 to vector<16x8xf32>
    %149 = arith.mulf %147, %148 : vector<16x8xf32>
    %150 = arith.truncf %149 : vector<16x8xf32> to vector<16x8xbf16>
    %151 = vector.extract_strided_slice %69 {offsets = [0, 56], sizes = [16, 8], strides = [1, 1]} : vector<16x96xf32> to vector<16x8xf32>
    %152 = arith.truncf %151 : vector<16x8xf32> to vector<16x8xbf16>
    %153 = vector.extract_strided_slice %69 {offsets = [0, 88], sizes = [16, 8], strides = [1, 1]} : vector<16x96xf32> to vector<16x8xf32>
    %154 = arith.truncf %153 : vector<16x8xf32> to vector<16x8xbf16>
    "tpu.trace_start"() <{level = 10 : i32, message = "sd,td->st"}> : () -> ()
    %cst_45 = arith.constant dense<0.000000e+00> : vector<16x16xf32>
    %155 = tpu.matmul %150, %152, %cst_45 {dimension_numbers = #tpu.dot_dimension_numbers<[1], [1], [0], [0], [0, 0, 1, 0], [], []>} : vector<16x8xbf16>, vector<16x8xbf16>, vector<16x16xf32> -> vector<16x16xf32>
    "tpu.trace_stop"() : () -> ()
    %156 = arith.addf %155, %37 : vector<16x16xf32>
    %cst_46 = arith.constant dense<0xFF800000> : vector<16xf32>
    %157 = vector.multi_reduction <maximumf>, %156, %cst_46 [1] : vector<16x16xf32> to vector<16xf32>
    %158 = vector.shape_cast %157 : vector<16xf32> to vector<16x1xf32>
    %159 = vector.broadcast %158 : vector<16x1xf32> to vector<16x16xf32>
    %160 = arith.subf %156, %159 : vector<16x16xf32>
    %161 = math.exp %160 : vector<16x16xf32>
    %cst_47 = arith.constant dense<0.000000e+00> : vector<16xf32>
    %162 = vector.multi_reduction <add>, %161, %cst_47 [1] : vector<16x16xf32> to vector<16xf32>
    %163 = vector.shape_cast %162 : vector<16xf32> to vector<16x1xf32>
    %164 = tpu.reciprocal %163 {approx = true} : vector<16x1xf32> -> vector<16x1xf32>
    %165 = vector.broadcast %164 : vector<16x1xf32> to vector<16x16xf32>
    %166 = arith.mulf %161, %165 : vector<16x16xf32>
    %167 = arith.truncf %166 : vector<16x16xf32> to vector<16x16xbf16>
    %cst_48 = arith.constant dense<0.000000e+00> : vector<16x8xf32>
    %168 = tpu.matmul %167, %154, %cst_48 {dimension_numbers = #tpu.dot_dimension_numbers<[1], [0], [0], [1], [0, 0, 1, 1], [], []>} : vector<16x16xbf16>, vector<16x8xbf16>, vector<16x8xf32> -> vector<16x8xf32>
    %169 = arith.truncf %168 : vector<16x8xf32> to vector<16x8xbf16>
    %170 = vector.extract_strided_slice %64 {offsets = [24, 0], sizes = [8, 32], strides = [1, 1]} : vector<32x32xbf16> to vector<8x32xbf16>
    %cst_49 = arith.constant dense<0.000000e+00> : vector<16x32xf32>
    %171 = tpu.matmul %169, %170, %cst_49 {dimension_numbers = #tpu.dot_dimension_numbers<[1], [0], [0], [1], [0, 0, 1, 1], [], []>} : vector<16x8xbf16>, vector<8x32xbf16>, vector<16x32xf32> -> vector<16x32xf32>
    %172 = arith.addf %146, %171 : vector<16x32xf32>
    %173 = vector.broadcast %65 : vector<1x32xf32> to vector<16x32xf32>
    %174 = arith.addf %172, %173 : vector<16x32xf32>
    %175 = arith.addf %61, %174 : vector<16x32xf32>
    %c0_50 = arith.constant 0 : index
    %c2688 = arith.constant 2688 : index
    %176 = vector.load %arg5[%c0_50, %c2688] : memref<1x3456xf32, #tpu.memory_space<vmem>>, vector<1x32xf32>
    %c0_51 = arith.constant 0 : index
    %c2816 = arith.constant 2816 : index
    %177 = vector.load %arg5[%c0_51, %c2816] : memref<1x3456xf32, #tpu.memory_space<vmem>>, vector<1x32xf32>
    %cst_52 = arith.constant dense<0.000000e+00> : vector<16xf32>
    %178 = vector.multi_reduction <add>, %175, %cst_52 [1] : vector<16x32xf32> to vector<16xf32>
    %179 = vector.shape_cast %178 : vector<16xf32> to vector<16x1xf32>
    %cst_53 = arith.constant 3.200000e+01 : f32
    %180 = vector.broadcast %cst_53 : f32 to vector<16x1xf32>
    %181 = arith.divf %179, %180 : vector<16x1xf32>
    %182 = vector.broadcast %181 : vector<16x1xf32> to vector<16x32xf32>
    %183 = arith.subf %175, %182 : vector<16x32xf32>
    %184 = arith.mulf %183, %183 : vector<16x32xf32>
    %cst_54 = arith.constant dense<0.000000e+00> : vector<16xf32>
    %185 = vector.multi_reduction <add>, %184, %cst_54 [1] : vector<16x32xf32> to vector<16xf32>
    %186 = vector.shape_cast %185 : vector<16xf32> to vector<16x1xf32>
    %cst_55 = arith.constant 3.200000e+01 : f32
    %187 = vector.broadcast %cst_55 : f32 to vector<16x1xf32>
    %188 = arith.divf %186, %187 : vector<16x1xf32>
    %189 = vector.broadcast %181 : vector<16x1xf32> to vector<16x32xf32>
    %190 = arith.subf %175, %189 : vector<16x32xf32>
    %cst_56 = arith.constant 9.99999974E-6 : f32
    %191 = vector.broadcast %cst_56 : f32 to vector<16x1xf32>
    %192 = arith.addf %188, %191 : vector<16x1xf32>
    %193 = math.rsqrt %192 : vector<16x1xf32>
    %194 = vector.broadcast %193 : vector<16x1xf32> to vector<16x32xf32>
    %195 = arith.mulf %190, %194 : vector<16x32xf32>
    %196 = vector.broadcast %176 : vector<1x32xf32> to vector<16x32xf32>
    %197 = arith.mulf %195, %196 : vector<16x32xf32>
    %198 = vector.broadcast %177 : vector<1x32xf32> to vector<16x32xf32>
    %199 = arith.addf %197, %198 : vector<16x32xf32>
    %200 = arith.truncf %199 : vector<16x32xf32> to vector<16x32xbf16>
    %c0_57 = arith.constant 0 : index
    %c0_58 = arith.constant 0 : index
    %201 = vector.load %arg2[%c0_57, %c0_58] : memref<32x2688xbf16, #tpu.memory_space<vmem>>, vector<32x2048xbf16>
    %cst_59 = arith.constant dense<0.000000e+00> : vector<16x2048xf32>
    %202 = tpu.matmul %200, %201, %cst_59 {dimension_numbers = #tpu.dot_dimension_numbers<[1], [0], [0], [1], [0, 0, 1, 1], [], []>} : vector<16x32xbf16>, vector<32x2048xbf16>, vector<16x2048xf32> -> vector<16x2048xf32>
    %c0_60 = arith.constant 0 : index
    %c512 = arith.constant 512 : index
    %203 = vector.load %arg5[%c0_60, %c512] : memref<1x3456xf32, #tpu.memory_space<vmem>>, vector<1x2048xf32>
    %204 = vector.broadcast %203 : vector<1x2048xf32> to vector<16x2048xf32>
    %205 = arith.addf %202, %204 : vector<16x2048xf32>
    %cst_61 = arith.constant 0.000000e+00 : f32
    %206 = vector.broadcast %cst_61 : f32 to vector<16x2048xf32>
    %207 = arith.maximumf %205, %206 : vector<16x2048xf32>
    %208 = arith.truncf %207 : vector<16x2048xf32> to vector<16x2048xbf16>
    %c0_62 = arith.constant 0 : index
    %c0_63 = arith.constant 0 : index
    %209 = vector.load %arg3[%c0_62, %c0_63] : memref<2048x32xbf16, #tpu.memory_space<vmem>>, vector<2048x32xbf16>
    %cst_64 = arith.constant dense<0.000000e+00> : vector<16x32xf32>
    %210 = tpu.matmul %208, %209, %cst_64 {dimension_numbers = #tpu.dot_dimension_numbers<[1], [0], [0], [1], [0, 0, 1, 1], [], []>} : vector<16x2048xbf16>, vector<2048x32xbf16>, vector<16x32xf32> -> vector<16x32xf32>
    %c0_65 = arith.constant 0 : index
    %c2560 = arith.constant 2560 : index
    %211 = vector.load %arg5[%c0_65, %c2560] : memref<1x3456xf32, #tpu.memory_space<vmem>>, vector<1x32xf32>
    %212 = vector.broadcast %211 : vector<1x32xf32> to vector<16x32xf32>
    %213 = arith.addf %210, %212 : vector<16x32xf32>
    %214 = arith.addf %199, %213 : vector<16x32xf32>
    %c0_66 = arith.constant 0 : index
    %c2944 = arith.constant 2944 : index
    %215 = vector.load %arg5[%c0_66, %c2944] : memref<1x3456xf32, #tpu.memory_space<vmem>>, vector<1x32xf32>
    %c0_67 = arith.constant 0 : index
    %c3072 = arith.constant 3072 : index
    %216 = vector.load %arg5[%c0_67, %c3072] : memref<1x3456xf32, #tpu.memory_space<vmem>>, vector<1x32xf32>
    %cst_68 = arith.constant dense<0.000000e+00> : vector<16xf32>
    %217 = vector.multi_reduction <add>, %214, %cst_68 [1] : vector<16x32xf32> to vector<16xf32>
    %218 = vector.shape_cast %217 : vector<16xf32> to vector<16x1xf32>
    %cst_69 = arith.constant 3.200000e+01 : f32
    %219 = vector.broadcast %cst_69 : f32 to vector<16x1xf32>
    %220 = arith.divf %218, %219 : vector<16x1xf32>
    %221 = vector.broadcast %220 : vector<16x1xf32> to vector<16x32xf32>
    %222 = arith.subf %214, %221 : vector<16x32xf32>
    %223 = arith.mulf %222, %222 : vector<16x32xf32>
    %cst_70 = arith.constant dense<0.000000e+00> : vector<16xf32>
    %224 = vector.multi_reduction <add>, %223, %cst_70 [1] : vector<16x32xf32> to vector<16xf32>
    %225 = vector.shape_cast %224 : vector<16xf32> to vector<16x1xf32>
    %cst_71 = arith.constant 3.200000e+01 : f32
    %226 = vector.broadcast %cst_71 : f32 to vector<16x1xf32>
    %227 = arith.divf %225, %226 : vector<16x1xf32>
    %228 = vector.broadcast %220 : vector<16x1xf32> to vector<16x32xf32>
    %229 = arith.subf %214, %228 : vector<16x32xf32>
    %cst_72 = arith.constant 9.99999974E-6 : f32
    %230 = vector.broadcast %cst_72 : f32 to vector<16x1xf32>
    %231 = arith.addf %227, %230 : vector<16x1xf32>
    %232 = math.rsqrt %231 : vector<16x1xf32>
    %233 = vector.broadcast %232 : vector<16x1xf32> to vector<16x32xf32>
    %234 = arith.mulf %229, %233 : vector<16x32xf32>
    %235 = vector.broadcast %215 : vector<1x32xf32> to vector<16x32xf32>
    %236 = arith.mulf %234, %235 : vector<16x32xf32>
    %237 = vector.broadcast %216 : vector<1x32xf32> to vector<16x32xf32>
    %238 = arith.addf %236, %237 : vector<16x32xf32>
    %c0_73 = arith.constant 0 : index
    %c2304 = arith.constant 2304 : index
    %239 = vector.load %arg2[%c0_73, %c2304] : memref<32x2688xbf16, #tpu.memory_space<vmem>>, vector<32x96xbf16>
    %c0_74 = arith.constant 0 : index
    %c256 = arith.constant 256 : index
    %240 = vector.load %arg5[%c0_74, %c256] : memref<1x3456xf32, #tpu.memory_space<vmem>>, vector<1x96xf32>
    %c0_75 = arith.constant 0 : index
    %c2432 = arith.constant 2432 : index
    %241 = vector.load %arg2[%c0_75, %c2432] : memref<32x2688xbf16, #tpu.memory_space<vmem>>, vector<32x32xbf16>
    %c0_76 = arith.constant 0 : index
    %c384 = arith.constant 384 : index
    %242 = vector.load %arg5[%c0_76, %c384] : memref<1x3456xf32, #tpu.memory_space<vmem>>, vector<1x32xf32>
    %243 = arith.truncf %238 : vector<16x32xf32> to vector<16x32xbf16>
    %cst_77 = arith.constant dense<0.000000e+00> : vector<16x96xf32>
    %244 = tpu.matmul %243, %239, %cst_77 {dimension_numbers = #tpu.dot_dimension_numbers<[1], [0], [0], [1], [0, 0, 1, 1], [], []>} : vector<16x32xbf16>, vector<32x96xbf16>, vector<16x96xf32> -> vector<16x96xf32>
    %245 = vector.broadcast %240 : vector<1x96xf32> to vector<16x96xf32>
    %246 = arith.addf %244, %245 : vector<16x96xf32>
    %247 = vector.extract_strided_slice %246 {offsets = [0, 0], sizes = [16, 8], strides = [1, 1]} : vector<16x96xf32> to vector<16x8xf32>
    %cst_78 = arith.constant 0.353553385 : f32
    %248 = vector.broadcast %cst_78 : f32 to vector<16x8xf32>
    %249 = arith.mulf %247, %248 : vector<16x8xf32>
    %250 = arith.truncf %249 : vector<16x8xf32> to vector<16x8xbf16>
    %251 = vector.extract_strided_slice %246 {offsets = [0, 32], sizes = [16, 8], strides = [1, 1]} : vector<16x96xf32> to vector<16x8xf32>
    %252 = arith.truncf %251 : vector<16x8xf32> to vector<16x8xbf16>
    %253 = vector.extract_strided_slice %246 {offsets = [0, 64], sizes = [16, 8], strides = [1, 1]} : vector<16x96xf32> to vector<16x8xf32>
    %254 = arith.truncf %253 : vector<16x8xf32> to vector<16x8xbf16>
    "tpu.trace_start"() <{level = 10 : i32, message = "sd,td->st"}> : () -> ()
    %cst_79 = arith.constant dense<0.000000e+00> : vector<16x16xf32>
    %255 = tpu.matmul %250, %252, %cst_79 {dimension_numbers = #tpu.dot_dimension_numbers<[1], [1], [0], [0], [0, 0, 1, 0], [], []>} : vector<16x8xbf16>, vector<16x8xbf16>, vector<16x16xf32> -> vector<16x16xf32>
    "tpu.trace_stop"() : () -> ()
    %256 = arith.addf %255, %37 : vector<16x16xf32>
    %cst_80 = arith.constant dense<0xFF800000> : vector<16xf32>
    %257 = vector.multi_reduction <maximumf>, %256, %cst_80 [1] : vector<16x16xf32> to vector<16xf32>
    %258 = vector.shape_cast %257 : vector<16xf32> to vector<16x1xf32>
    %259 = vector.broadcast %258 : vector<16x1xf32> to vector<16x16xf32>
    %260 = arith.subf %256, %259 : vector<16x16xf32>
    %261 = math.exp %260 : vector<16x16xf32>
    %cst_81 = arith.constant dense<0.000000e+00> : vector<16xf32>
    %262 = vector.multi_reduction <add>, %261, %cst_81 [1] : vector<16x16xf32> to vector<16xf32>
    %263 = vector.shape_cast %262 : vector<16xf32> to vector<16x1xf32>
    %264 = tpu.reciprocal %263 {approx = true} : vector<16x1xf32> -> vector<16x1xf32>
    %265 = vector.broadcast %264 : vector<16x1xf32> to vector<16x16xf32>
    %266 = arith.mulf %261, %265 : vector<16x16xf32>
    %267 = arith.truncf %266 : vector<16x16xf32> to vector<16x16xbf16>
    %cst_82 = arith.constant dense<0.000000e+00> : vector<16x8xf32>
    %268 = tpu.matmul %267, %254, %cst_82 {dimension_numbers = #tpu.dot_dimension_numbers<[1], [0], [0], [1], [0, 0, 1, 1], [], []>} : vector<16x16xbf16>, vector<16x8xbf16>, vector<16x8xf32> -> vector<16x8xf32>
    %269 = arith.truncf %268 : vector<16x8xf32> to vector<16x8xbf16>
    %270 = vector.extract_strided_slice %241 {offsets = [0, 0], sizes = [8, 32], strides = [1, 1]} : vector<32x32xbf16> to vector<8x32xbf16>
    %cst_83 = arith.constant dense<0.000000e+00> : vector<16x32xf32>
    %271 = tpu.matmul %269, %270, %cst_83 {dimension_numbers = #tpu.dot_dimension_numbers<[1], [0], [0], [1], [0, 0, 1, 1], [], []>} : vector<16x8xbf16>, vector<8x32xbf16>, vector<16x32xf32> -> vector<16x32xf32>
    %272 = vector.extract_strided_slice %246 {offsets = [0, 8], sizes = [16, 8], strides = [1, 1]} : vector<16x96xf32> to vector<16x8xf32>
    %cst_84 = arith.constant 0.353553385 : f32
    %273 = vector.broadcast %cst_84 : f32 to vector<16x8xf32>
    %274 = arith.mulf %272, %273 : vector<16x8xf32>
    %275 = arith.truncf %274 : vector<16x8xf32> to vector<16x8xbf16>
    %276 = vector.extract_strided_slice %246 {offsets = [0, 40], sizes = [16, 8], strides = [1, 1]} : vector<16x96xf32> to vector<16x8xf32>
    %277 = arith.truncf %276 : vector<16x8xf32> to vector<16x8xbf16>
    %278 = vector.extract_strided_slice %246 {offsets = [0, 72], sizes = [16, 8], strides = [1, 1]} : vector<16x96xf32> to vector<16x8xf32>
    %279 = arith.truncf %278 : vector<16x8xf32> to vector<16x8xbf16>
    "tpu.trace_start"() <{level = 10 : i32, message = "sd,td->st"}> : () -> ()
    %cst_85 = arith.constant dense<0.000000e+00> : vector<16x16xf32>
    %280 = tpu.matmul %275, %277, %cst_85 {dimension_numbers = #tpu.dot_dimension_numbers<[1], [1], [0], [0], [0, 0, 1, 0], [], []>} : vector<16x8xbf16>, vector<16x8xbf16>, vector<16x16xf32> -> vector<16x16xf32>
    "tpu.trace_stop"() : () -> ()
    %281 = arith.addf %280, %37 : vector<16x16xf32>
    %cst_86 = arith.constant dense<0xFF800000> : vector<16xf32>
    %282 = vector.multi_reduction <maximumf>, %281, %cst_86 [1] : vector<16x16xf32> to vector<16xf32>
    %283 = vector.shape_cast %282 : vector<16xf32> to vector<16x1xf32>
    %284 = vector.broadcast %283 : vector<16x1xf32> to vector<16x16xf32>
    %285 = arith.subf %281, %284 : vector<16x16xf32>
    %286 = math.exp %285 : vector<16x16xf32>
    %cst_87 = arith.constant dense<0.000000e+00> : vector<16xf32>
    %287 = vector.multi_reduction <add>, %286, %cst_87 [1] : vector<16x16xf32> to vector<16xf32>
    %288 = vector.shape_cast %287 : vector<16xf32> to vector<16x1xf32>
    %289 = tpu.reciprocal %288 {approx = true} : vector<16x1xf32> -> vector<16x1xf32>
    %290 = vector.broadcast %289 : vector<16x1xf32> to vector<16x16xf32>
    %291 = arith.mulf %286, %290 : vector<16x16xf32>
    %292 = arith.truncf %291 : vector<16x16xf32> to vector<16x16xbf16>
    %cst_88 = arith.constant dense<0.000000e+00> : vector<16x8xf32>
    %293 = tpu.matmul %292, %279, %cst_88 {dimension_numbers = #tpu.dot_dimension_numbers<[1], [0], [0], [1], [0, 0, 1, 1], [], []>} : vector<16x16xbf16>, vector<16x8xbf16>, vector<16x8xf32> -> vector<16x8xf32>
    %294 = arith.truncf %293 : vector<16x8xf32> to vector<16x8xbf16>
    %295 = vector.extract_strided_slice %241 {offsets = [8, 0], sizes = [8, 32], strides = [1, 1]} : vector<32x32xbf16> to vector<8x32xbf16>
    %cst_89 = arith.constant dense<0.000000e+00> : vector<16x32xf32>
    %296 = tpu.matmul %294, %295, %cst_89 {dimension_numbers = #tpu.dot_dimension_numbers<[1], [0], [0], [1], [0, 0, 1, 1], [], []>} : vector<16x8xbf16>, vector<8x32xbf16>, vector<16x32xf32> -> vector<16x32xf32>
    %297 = arith.addf %271, %296 : vector<16x32xf32>
    %298 = vector.extract_strided_slice %246 {offsets = [0, 16], sizes = [16, 8], strides = [1, 1]} : vector<16x96xf32> to vector<16x8xf32>
    %cst_90 = arith.constant 0.353553385 : f32
    %299 = vector.broadcast %cst_90 : f32 to vector<16x8xf32>
    %300 = arith.mulf %298, %299 : vector<16x8xf32>
    %301 = arith.truncf %300 : vector<16x8xf32> to vector<16x8xbf16>
    %302 = vector.extract_strided_slice %246 {offsets = [0, 48], sizes = [16, 8], strides = [1, 1]} : vector<16x96xf32> to vector<16x8xf32>
    %303 = arith.truncf %302 : vector<16x8xf32> to vector<16x8xbf16>
    %304 = vector.extract_strided_slice %246 {offsets = [0, 80], sizes = [16, 8], strides = [1, 1]} : vector<16x96xf32> to vector<16x8xf32>
    %305 = arith.truncf %304 : vector<16x8xf32> to vector<16x8xbf16>
    "tpu.trace_start"() <{level = 10 : i32, message = "sd,td->st"}> : () -> ()
    %cst_91 = arith.constant dense<0.000000e+00> : vector<16x16xf32>
    %306 = tpu.matmul %301, %303, %cst_91 {dimension_numbers = #tpu.dot_dimension_numbers<[1], [1], [0], [0], [0, 0, 1, 0], [], []>} : vector<16x8xbf16>, vector<16x8xbf16>, vector<16x16xf32> -> vector<16x16xf32>
    "tpu.trace_stop"() : () -> ()
    %307 = arith.addf %306, %37 : vector<16x16xf32>
    %cst_92 = arith.constant dense<0xFF800000> : vector<16xf32>
    %308 = vector.multi_reduction <maximumf>, %307, %cst_92 [1] : vector<16x16xf32> to vector<16xf32>
    %309 = vector.shape_cast %308 : vector<16xf32> to vector<16x1xf32>
    %310 = vector.broadcast %309 : vector<16x1xf32> to vector<16x16xf32>
    %311 = arith.subf %307, %310 : vector<16x16xf32>
    %312 = math.exp %311 : vector<16x16xf32>
    %cst_93 = arith.constant dense<0.000000e+00> : vector<16xf32>
    %313 = vector.multi_reduction <add>, %312, %cst_93 [1] : vector<16x16xf32> to vector<16xf32>
    %314 = vector.shape_cast %313 : vector<16xf32> to vector<16x1xf32>
    %315 = tpu.reciprocal %314 {approx = true} : vector<16x1xf32> -> vector<16x1xf32>
    %316 = vector.broadcast %315 : vector<16x1xf32> to vector<16x16xf32>
    %317 = arith.mulf %312, %316 : vector<16x16xf32>
    %318 = arith.truncf %317 : vector<16x16xf32> to vector<16x16xbf16>
    %cst_94 = arith.constant dense<0.000000e+00> : vector<16x8xf32>
    %319 = tpu.matmul %318, %305, %cst_94 {dimension_numbers = #tpu.dot_dimension_numbers<[1], [0], [0], [1], [0, 0, 1, 1], [], []>} : vector<16x16xbf16>, vector<16x8xbf16>, vector<16x8xf32> -> vector<16x8xf32>
    %320 = arith.truncf %319 : vector<16x8xf32> to vector<16x8xbf16>
    %321 = vector.extract_strided_slice %241 {offsets = [16, 0], sizes = [8, 32], strides = [1, 1]} : vector<32x32xbf16> to vector<8x32xbf16>
    %cst_95 = arith.constant dense<0.000000e+00> : vector<16x32xf32>
    %322 = tpu.matmul %320, %321, %cst_95 {dimension_numbers = #tpu.dot_dimension_numbers<[1], [0], [0], [1], [0, 0, 1, 1], [], []>} : vector<16x8xbf16>, vector<8x32xbf16>, vector<16x32xf32> -> vector<16x32xf32>
    %323 = arith.addf %297, %322 : vector<16x32xf32>
    %324 = vector.extract_strided_slice %246 {offsets = [0, 24], sizes = [16, 8], strides = [1, 1]} : vector<16x96xf32> to vector<16x8xf32>
    %cst_96 = arith.constant 0.353553385 : f32
    %325 = vector.broadcast %cst_96 : f32 to vector<16x8xf32>
    %326 = arith.mulf %324, %325 : vector<16x8xf32>
    %327 = arith.truncf %326 : vector<16x8xf32> to vector<16x8xbf16>
    %328 = vector.extract_strided_slice %246 {offsets = [0, 56], sizes = [16, 8], strides = [1, 1]} : vector<16x96xf32> to vector<16x8xf32>
    %329 = arith.truncf %328 : vector<16x8xf32> to vector<16x8xbf16>
    %330 = vector.extract_strided_slice %246 {offsets = [0, 88], sizes = [16, 8], strides = [1, 1]} : vector<16x96xf32> to vector<16x8xf32>
    %331 = arith.truncf %330 : vector<16x8xf32> to vector<16x8xbf16>
    "tpu.trace_start"() <{level = 10 : i32, message = "sd,td->st"}> : () -> ()
    %cst_97 = arith.constant dense<0.000000e+00> : vector<16x16xf32>
    %332 = tpu.matmul %327, %329, %cst_97 {dimension_numbers = #tpu.dot_dimension_numbers<[1], [1], [0], [0], [0, 0, 1, 0], [], []>} : vector<16x8xbf16>, vector<16x8xbf16>, vector<16x16xf32> -> vector<16x16xf32>
    "tpu.trace_stop"() : () -> ()
    %333 = arith.addf %332, %37 : vector<16x16xf32>
    %cst_98 = arith.constant dense<0xFF800000> : vector<16xf32>
    %334 = vector.multi_reduction <maximumf>, %333, %cst_98 [1] : vector<16x16xf32> to vector<16xf32>
    %335 = vector.shape_cast %334 : vector<16xf32> to vector<16x1xf32>
    %336 = vector.broadcast %335 : vector<16x1xf32> to vector<16x16xf32>
    %337 = arith.subf %333, %336 : vector<16x16xf32>
    %338 = math.exp %337 : vector<16x16xf32>
    %cst_99 = arith.constant dense<0.000000e+00> : vector<16xf32>
    %339 = vector.multi_reduction <add>, %338, %cst_99 [1] : vector<16x16xf32> to vector<16xf32>
    %340 = vector.shape_cast %339 : vector<16xf32> to vector<16x1xf32>
    %341 = tpu.reciprocal %340 {approx = true} : vector<16x1xf32> -> vector<16x1xf32>
    %342 = vector.broadcast %341 : vector<16x1xf32> to vector<16x16xf32>
    %343 = arith.mulf %338, %342 : vector<16x16xf32>
    %344 = arith.truncf %343 : vector<16x16xf32> to vector<16x16xbf16>
    %cst_100 = arith.constant dense<0.000000e+00> : vector<16x8xf32>
    %345 = tpu.matmul %344, %331, %cst_100 {dimension_numbers = #tpu.dot_dimension_numbers<[1], [0], [0], [1], [0, 0, 1, 1], [], []>} : vector<16x16xbf16>, vector<16x8xbf16>, vector<16x8xf32> -> vector<16x8xf32>
    %346 = arith.truncf %345 : vector<16x8xf32> to vector<16x8xbf16>
    %347 = vector.extract_strided_slice %241 {offsets = [24, 0], sizes = [8, 32], strides = [1, 1]} : vector<32x32xbf16> to vector<8x32xbf16>
    %cst_101 = arith.constant dense<0.000000e+00> : vector<16x32xf32>
    %348 = tpu.matmul %346, %347, %cst_101 {dimension_numbers = #tpu.dot_dimension_numbers<[1], [0], [0], [1], [0, 0, 1, 1], [], []>} : vector<16x8xbf16>, vector<8x32xbf16>, vector<16x32xf32> -> vector<16x32xf32>
    %349 = arith.addf %323, %348 : vector<16x32xf32>
    %350 = vector.broadcast %242 : vector<1x32xf32> to vector<16x32xf32>
    %351 = arith.addf %349, %350 : vector<16x32xf32>
    %cst_102 = arith.constant dense<0.000000e+00> : vector<2x32xf32>
    %352 = tpu.matmul %59, %351, %cst_102 {dimension_numbers = #tpu.dot_dimension_numbers<[1], [0], [0], [1], [0, 0, 1, 1], [], []>} : vector<2x16xf32>, vector<16x32xf32>, vector<2x32xf32> -> vector<2x32xf32>
    %353 = arith.truncf %352 : vector<2x32xf32> to vector<2x32xbf16>
    %c0_103 = arith.constant 0 : index
    %c2560_104 = arith.constant 2560 : index
    %354 = vector.load %arg2[%c0_103, %c2560_104] : memref<32x2688xbf16, #tpu.memory_space<vmem>>, vector<32x16xbf16>
    %cst_105 = arith.constant dense<0.000000e+00> : vector<2x16xf32>
    %355 = tpu.matmul %353, %354, %cst_105 {dimension_numbers = #tpu.dot_dimension_numbers<[1], [0], [0], [1], [0, 0, 1, 1], [], []>} : vector<2x32xbf16>, vector<32x16xbf16>, vector<2x16xf32> -> vector<2x16xf32>
    %c0_106 = arith.constant 0 : index
    %c3200 = arith.constant 3200 : index
    %356 = vector.load %arg5[%c0_106, %c3200] : memref<1x3456xf32, #tpu.memory_space<vmem>>, vector<1x16xf32>
    %357 = vector.broadcast %356 : vector<1x16xf32> to vector<2x16xf32>
    %358 = arith.addf %355, %357 : vector<2x16xf32>
    %c0_107 = arith.constant 0 : index
    %c0_108 = arith.constant 0 : index
    %359 = vector.load %arg4[%c0_107, %c0_108] : memref<16x8xf32, #tpu.memory_space<vmem>>, vector<16x8xf32>
    %cst_109 = arith.constant dense<0.000000e+00> : vector<2x8xf32>
    %360 = tpu.matmul %358, %359, %cst_109 {dimension_numbers = #tpu.dot_dimension_numbers<[1], [0], [0], [1], [0, 0, 1, 1], [], []>} : vector<2x16xf32>, vector<16x8xf32>, vector<2x8xf32> -> vector<2x8xf32>
    %c0_110 = arith.constant 0 : index
    %c3328 = arith.constant 3328 : index
    %361 = vector.load %arg5[%c0_110, %c3328] : memref<1x3456xf32, #tpu.memory_space<vmem>>, vector<1x8xf32>
    %362 = vector.broadcast %361 : vector<1x8xf32> to vector<2x8xf32>
    %363 = arith.addf %360, %362 : vector<2x8xf32>
    %c0_111 = arith.constant 0 : index
    %c0_112 = arith.constant 0 : index
    %c0_113 = arith.constant 0 : index
    %364 = vector.load %arg6[%c0_111, %c0_112, %c0_113] : memref<1x2x8xf32, #tpu.memory_space<vmem>>, vector<1x2x8xf32>
    %365 = vector.shape_cast %364 : vector<1x2x8xf32> to vector<2x8xf32>
    %366 = vector.shape_cast %363 : vector<2x8xf32> to vector<1x2x8xf32>
    tpu.vector_store %arg6[%c0_111, %c0_112, %c0_113], %366 {strides = array<i32>} : memref<1x2x8xf32, #tpu.memory_space<vmem>>, vector<1x2x8xf32>,
    return
  }
  func.func @transform_0(%arg0: i32) -> (i32, i32, i32) {
    %c0_i32 = arith.constant 0 : i32
    %c0_i32_0 = arith.constant 0 : i32
    %c0_i32_1 = arith.constant 0 : i32
    return %arg0, %c0_i32, %c0_i32_0 : i32, i32, i32
  }
  func.func @transform_1(%arg0: i32) -> (i32, i32) {
    %c0_i32 = arith.constant 0 : i32
    %c0_i32_0 = arith.constant 0 : i32
    %c0_i32_1 = arith.constant 0 : i32
    return %c0_i32, %c0_i32_0 : i32, i32
  }
  func.func @transform_2(%arg0: i32) -> (i32, i32) {
    %c0_i32 = arith.constant 0 : i32
    %c0_i32_0 = arith.constant 0 : i32
    %c0_i32_1 = arith.constant 0 : i32
    return %c0_i32, %c0_i32_0 : i32, i32
  }
  func.func @transform_3(%arg0: i32) -> (i32, i32) {
    %c0_i32 = arith.constant 0 : i32
    %c0_i32_0 = arith.constant 0 : i32
    %c0_i32_1 = arith.constant 0 : i32
    return %c0_i32, %c0_i32_0 : i32, i32
  }
  func.func @transform_4(%arg0: i32) -> (i32, i32) {
    %c0_i32 = arith.constant 0 : i32
    %c0_i32_0 = arith.constant 0 : i32
    %c0_i32_1 = arith.constant 0 : i32
    return %c0_i32, %c0_i32_0 : i32, i32
  }
  func.func @transform_5(%arg0: i32) -> (i32, i32, i32) {
    %c0_i32 = arith.constant 0 : i32
    %c0_i32_0 = arith.constant 0 : i32
    %c0_i32_1 = arith.constant 0 : i32
    return %arg0, %c0_i32, %c0_i32_0 : i32, i32, i32
  }
}

</mosaic_0001>

<bundles_post_ra>
// kernel: attention_doc2vec_forward.1
= control target key start
LH: loop header
LB: loop body
LE: loop exit
PB: predicated region body
PF: predicated region fallthrough
CT: control target
= control target key end

     0   :  { %v4905_v0 = vmov 0.0   ;;  %vm4906_vm0 = vmmov 0   ;;  %vm100_vm1 = vcmask 261120   ;;  %s5919_s0 = inlined_call_operand.vmem [shape: f32[1,16,32], index: 0, kind: input, shape index: {}]   ;;  %s5920_s1 = inlined_call_operand.vmem [shape: bf16[32,2688], index: 1, kind: input, shape index: {}]   ;;  %s5921_s2 = inlined_call_operand.vmem [shape: bf16[2048,32], index: 2, kind: input, shape index: {}]   ;;  %s5922_s3 = inlined_call_operand.vmem [shape: f32[16,8], index: 3, kind: input, shape index: {}]   ;;  %s5923_s4 = inlined_call_operand.vmem [shape: f32[1,3456], index: 4, kind: input, shape index: {}]   ;;  %s5924_s5 = inlined_call_operand.hbm [shape: f32[1,2,8], index: 5, kind: output, shape index: {}]  }
   0x1   :  { %4420 = vmatprep.subr.bf16.mxu0 %v4905_v0  ;;  %v4625_v1 = vld [vmem:[%s5920_s1 + $0x40] ss:$84 sps:$4 sm:$0xff]   ;;  %4424 = vmatprep.mubr.msk.bf16.mxu0 %vm4906_vm0, %v4905_v0  ;;  %v4626_v2 = vld [vmem:[%s5920_s1 + $0xe8] ss:$84 sps:$4 sm:$0xff]  }
   0x2   :  { %v69_v3 = vld [vmem:[%s5919_s0] sm:$0xff]  ;;  %4428 = vmatprep.subr.bf16.mxu1 %v4905_v0  ;;  %4430 = vmatprep.mubr.msk.bf16.mxu1 %vm4906_vm0, %v4905_v0  ;;  %v70_v4 = vld [vmem:[%s5919_s0 + $0x8] sm:$0xff] }
   0x3   :  { %4421 = vmatpush3.bf16.msra.mxu0 %v4625_v1  ;;  %v81_v5 = vpack.c.bf16 %v70_v4, %v69_v3 }
   0x4   :  { %4422 = vmatprep.subr.bf16.mxu0 %v4905_v0 }
   0x7   :  { %4423 = vmatpush3.bf16.msra.mxu0 %v4626_v2 }
   0x8   :  { %4434 = vmatprep.subr.bf16.mxu0 %v4905_v0 }
   0xa   :  { %4425 = vmatmul.mubr.msk.bf16.vlgmr.msra.gmra.mrb[0].mxu0 %vm100_vm1, %v81_v5 }
   0xb   :  { %4436 = vmatprep.mubr.msk.bf16.mxu0 %vm4906_vm0, %v4905_v0 }
   0xc   :  { %10 = vsyncpa [#allocation3], 0  ;;  %v3967_v6 = vld [vmem:[%s5923_s4] ss:$0 sm:$0xff]  ;;  %s4907_s28 = smov 96   ;;  %s4908_s29 = smov 120   ;;  %v22_v22 = vlaneseq }
   0xd   :  { %s4909_s30 = smov 88   ;;  %vm152_vm2 = vcmask 64512   ;;  %v4910_v29 = vmov -1e+30   ;;  %vm200_vm5 = vcmask 130048   ;;  %s4911_s6 = smov 56  }
   0xe   :  { %v4999_v23 = vshrl.u32 %v22_v22, 7  ;;  %v50_v24 = vand.u32 127, %v22_v22  ;;  %s4912_s7 = smov 64   ;;  %s4913_s8 = smov 80   ;;  %vm398_vm6 = vcmask 1043456   ;;  %vm3951_vm8 = vcmask 58368  }
   0xf   :  { %s4914_s9 = smov 112   ;;  %s4915_s14 = smov 72  }
  0x10   :  { %v24_v25 = vadd.s32 8, %v4999_v23  ;;  %v29_v26 = vand.u32 1, %v4999_v23  ;;  %v5003_v27 = vand.u32 1, %v50_v24  ;;  %v76_v24 = vld [vmem:[%s5920_s1 + $0x44] sm:$0xf]  ;;  %s4916_s15 = smov 48  }
  0x11   :  { %s4917_s16 = smov 104   ;;  %s4918_s19 = smov 40  }
  0x12   :  { %v36_v28 = vand.u32 1, %v24_v25  ;;  %vm63_vm3 = vcmp.eq.s32.totalorder %v29_v26, %v5003_v27  ;;  %v447_v25 = vsel %vm398_vm6, %v76_v24, 0  ;;  %v77_v26 = vld [vmem:[%s5920_s1 + $0x98] sm:$0xf]  ;;  %vm67_vm7 = vcmp.eq.s32.totalorder %v4999_v23, %v5003_v27  ;;  %s4921_s12 = smov [#allocation2]  }
  0x13   :  { %v5007_v30 = vsel %vm63_vm3, 0.0, %v4910_v29  ;;  %s3959_s13 = sshll.u32 %s4921_s12, 4  ;;  %s3960_s13 = int_to_ptr.vmem [resolvable:$true] %s3959_s13 }
  0x14   :  { %vm64_vm4 = vcmp.eq.s32.totalorder %v36_v28, %v5003_v27  ;;  %v400_v28 = vsel %vm398_vm6, %v77_v26, 0  ;;  %v3870_v27 = vld [vmem:[%s5922_s3 + $0x8] sm:$0xff]  ;;  %p4886_p1 = scmp.lt.s32.totalorder %s3960_s13, %s3960_s13 }
  0x15   :  { %v5009_v32 = vsel %vm64_vm4, 0.0, %v4910_v29 }
  0xdd   :  { %v138_v7 = vpop.f32.mrb[0].mxu0 }
  0xde   :  { %v139_v8 = vadd.f32 %v3967_v6, %v138_v7  ;;  %v4426_v9 = vpop.f32.mrb[1].mxu0 }
  0xdf   :  { %v141_v10 = vpop.f32.mrb[2].mxu0 }
  0xe0   :  { %v142_v11 = vadd.f32 %v3967_v6, %v141_v10  ;;  %v4427_v12 = vpop.f32.mrb[3].mxu0  ;;  %v145_v13 = vmul.f32 0.35355338, %v139_v8 }
  0xe2   :  { %v146_v14 = vmul.f32 0.35355338, %v142_v11  ;;  %v4978_v15 = vpack.c.bf16 %v142_v11, %v139_v8 }
  0xe4   :  { %v4980_v16 = vpack.c.bf16 %v146_v14, %v145_v13  ;;  %150 = vrot.lane.b32.xlu0 %v4978_v15, %s4907_s28 }
  0xe6   :  { %273 = vrot.lane.b32.xlu1 %v4980_v16, %s4908_s29 }
  0xe8   :  { %275 = vrot.lane.b32.xlu0 %v4978_v15, %s4909_s30 }
 0x156   :  { %v151_v17 = vpop.permute.xlu0 %150 }
 0x157   :  { %v157_v18 = vsel %vm152_vm2, %v151_v17, 0 }
 0x158   :  { %4429 = vmatpush3.bf16.xpose.msra.mxu1 %v157_v18  ;;  %v274_v21 = vpop.permute.xlu1 %273 }
 0x159   :  { %4440 = vmatprep.subr.bf16.mxu1 %v4905_v0 }
 0x15a   :  { %v276_v19 = vpop.permute.xlu0 %275 }
 0x15b   :  { %v281_v20 = vsel %vm152_vm2, %v276_v19, 0 }
 0x15f   :  { %4431 = vmatmul.mubr.msk.bf16.vlgmr.msra.gmra.mrb[0].mxu1 %vm152_vm2, %v4980_v16 }
 0x160   :  { %4441 = vmatpush3.bf16.xpose.msra.mxu1 %v281_v20  ;;  %4442 = vmatprep.mubr.msk.bf16.mxu1 %vm4906_vm0, %v4905_v0 }
 0x161   :  { %4452 = vmatprep.subr.bf16.mxu1 %v4905_v0 }
 0x167   :  { %4443 = vmatmul.mubr.msk.bf16.vlgmr.msra.gmra.mrb[4].mxu1 %vm152_vm2, %v274_v21 }
 0x168   :  { %4454 = vmatprep.mubr.msk.bf16.mxu1 %vm4906_vm0, %v4905_v0  ;;  %4453 = vmatpush3.bf16.msra.mxu1 %v400_v28 }
 0x169   :  { %4464 = vmatprep.subr.bf16.mxu1 %v4905_v0 }
 0x232   :  { %v193_v31 = vpop.f32.mrb[0].mxu1 }
 0x233   :  { %v194_v33 = vadd.f32 %v193_v31, %v5007_v30  ;;  %v4432_v34 = vpop.f32.mrb[1].mxu1 }
 0x234   :  { %v196_v35 = vpop.f32.mrb[2].mxu1 }
 0x235   :  { %v197_v36 = vadd.f32 %v196_v35, %v5009_v32  ;;  %v4433_v37 = vpop.f32.mrb[3].mxu1  ;;  %v201_v38 = vsel %vm200_vm5, %v194_v33, -inf }
 0x236   :  { %202 = vmax.xlane.f32.xlu1 %v201_v38 }
 0x237   :  { %v204_v39 = vsel %vm200_vm5, %v197_v36, -inf }
 0x238   :  { %205 = vmax.xlane.f32.xlu0 %v204_v39 }
 0x23a   :  { %v317_v40 = vpop.f32.mrb[4].mxu1 }
 0x23b   :  { %v318_v41 = vadd.f32 %v317_v40, %v5007_v30  ;;  %v4444_v42 = vpop.f32.mrb[5].mxu1 }
 0x23c   :  { %v320_v43 = vpop.f32.mrb[6].mxu1 }
 0x23d   :  { %v321_v44 = vadd.f32 %v320_v43, %v5009_v32  ;;  %v4445_v45 = vpop.f32.mrb[7].mxu1  ;;  %v324_v46 = vsel %vm200_vm5, %v318_v41, -inf }
 0x23e   :  { %325 = vmax.xlane.f32.xlu0 %v324_v46 }
 0x23f   :  { %v327_v47 = vsel %vm200_vm5, %v321_v44, -inf }
 0x240   :  { %328 = vmax.xlane.f32.xlu1 %v327_v47 }
 0x2c3   :  { %v203_v48 = vpop.xlane.xlu1 %202 }
 0x2c4   :  { %v207_v49 = vsub.f32 %v194_v33, %v203_v48 }
 0x2c5   :  { %v206_v50 = vpop.xlane.xlu0 %205 }
 0x2c6   :  { %v209_v51 = vmul.f32 1.442695, %v207_v49  ;;  %v208_v52 = vsub.f32 %v197_v36, %v206_v50 }
 0x2c8   :  { %4807 = vpow2.f32 %v209_v51  ;;  %v211_v53 = vmul.f32 1.442695, %v208_v52 }
 0x2ca   :  { %4809 = vpow2.f32 %v211_v53 }
 0x2cb   :  { %v326_v54 = vpop.xlane.xlu0 %325 }
 0x2cc   :  { %v330_v55 = vsub.f32 %v318_v41, %v326_v54 }
 0x2cd   :  { %v329_v56 = vpop.xlane.xlu1 %328 }
 0x2ce   :  { %v332_v57 = vmul.f32 1.442695, %v330_v55  ;;  %v331_v58 = vsub.f32 %v321_v44, %v329_v56 }
 0x2d0   :  { %4811 = vpow2.f32 %v332_v57  ;;  %v334_v59 = vmul.f32 1.442695, %v331_v58 }
 0x2d2   :  { %v4808_v60 = vpop.eup %4807  ;;  %4813 = vpow2.f32 %v334_v59 }
 0x2d3   :  { %v213_v61 = vsel %vm200_vm5, %v4808_v60, 0.0 }
 0x2d4   :  { %v4810_v62 = vpop.eup %4809  ;;  %214 = vadd.xlane.f32.xlu0 %v213_v61 }
 0x2d5   :  { %v216_v63 = vsel %vm200_vm5, %v4810_v62, 0.0 }
 0x2d6   :  { %217 = vadd.xlane.f32.xlu1 %v216_v63 }
 0x2da   :  { %v4812_v1 = vpop.eup %4811 }
 0x2db   :  { %v336_v2 = vsel %vm200_vm5, %v4812_v1, 0.0 }
 0x2dc   :  { %v4814_v3 = vpop.eup %4813  ;;  %337 = vadd.xlane.f32.xlu0 %v336_v2 }
 0x2dd   :  { %v339_v4 = vsel %vm200_vm5, %v4814_v3, 0.0 }
 0x2de   :  { %340 = vadd.xlane.f32.xlu1 %v339_v4 }
 0x2ef   :  { %347 = vrot.lane.b32.xlu1 %v4978_v15, %s4911_s6 }
 0x2f2   :  { %224 = vrot.lane.b32.xlu0 %v4978_v15, %s4912_s7 }
 0x2f3   :  { %492 = vrot.lane.b32.xlu1 %v4978_v15, %s4913_s8 }
 0x2f6   :  { %490 = vrot.lane.b32.xlu0 %v4980_v16, %s4914_s9 }
 0x361   :  { %v215_v5 = vpop.xlane.xlu0 %214 }
 0x362   :  { %4815 = vrcp.f32 %v215_v5 }
 0x363   :  { %v218_v6 = vpop.xlane.xlu1 %217 }
 0x364   :  { %4817 = vrcp.f32 %v218_v6 }
 0x369   :  { %v338_v7 = vpop.xlane.xlu0 %337 }
 0x36a   :  { %4819 = vrcp.f32 %v338_v7 }
 0x36b   :  { %v341_v8 = vpop.xlane.xlu1 %340 }
 0x36c   :  { %v4816_v9 = vpop.eup %4815  ;;  %4821 = vrcp.f32 %v341_v8 }
 0x36d   :  { %v225_v10 = vpop.permute.xlu0 %224  ;;  %v221_v12 = vmul.f32 %v4816_v9, %v4808_v60 }
 0x36e   :  { %v4818_v11 = vpop.eup %4817  ;;  %4435 = vmatpush3.bf16.msra.mxu0 %v225_v10 }
 0x36f   :  { %v222_v13 = vmul.f32 %v4818_v11, %v4810_v62  ;;  %4446 = vmatprep.subr.bf16.mxu0 %v4905_v0  ;;  %v348_v17 = vpop.permute.xlu1 %347 }
 0x371   :  { %v223_v14 = vpack.c.bf16 %v222_v13, %v221_v12  ;;  %v491_v43 = vpop.permute.xlu0 %490 }
 0x373   :  { %4437 = vmatmul.mubr.msk.bf16.vlgmr.msra.gmra.mrb[4].mxu0 %vm200_vm5, %v223_v14  ;;  %v493_v38 = vpop.permute.xlu1 %492 }
 0x374   :  { %v4820_v18 = vpop.eup %4819  ;;  %4447 = vmatpush3.bf16.msra.mxu0 %v348_v17  ;;  %4448 = vmatprep.mubr.msk.bf16.mxu0 %vm4906_vm0, %v4905_v0  ;;  %v498_v42 = vsel %vm152_vm2, %v493_v38, 0 }
 0x375   :  { %4458 = vmatprep.subr.bf16.mxu0 %v4905_v0  ;;  %v344_v20 = vmul.f32 %v4820_v18, %v4812_v1 }
 0x376   :  { %v4822_v19 = vpop.eup %4821 }
 0x377   :  { %v345_v21 = vmul.f32 %v4822_v19, %v4814_v3 }
 0x379   :  { %v346_v22 = vpack.c.bf16 %v345_v21, %v344_v20  ;;  %v78_v21 = vld [vmem:[%s5920_s1 + $0xec] sm:$0xf] }
 0x37b   :  { %4449 = vmatmul.mubr.msk.bf16.vlgmr.msra.gmra.mrb[8].mxu0 %vm200_vm5, %v346_v22  ;;  %v616_v22 = vsel %vm398_vm6, %v78_v21, 0 }
 0x37c   :  { %4460 = vmatprep.mubr.msk.bf16.mxu0 %vm4906_vm0, %v4905_v0  ;;  %4459 = vmatpush3.bf16.msra.mxu0 %v447_v25 }
 0x37d   :  { %4470 = vmatprep.subr.bf16.mxu0 %v4905_v0 }
 0x446   :  { %v264_v29 = vpop.f32.mrb[4].mxu0 }
 0x447   :  { %v4438_v31 = vpop.f32.mrb[5].mxu0 }
 0x448   :  { %v267_v33 = vpop.f32.mrb[6].mxu0 }
 0x449   :  { %v271_v34 = vpack.c.bf16 %v267_v33, %v264_v29  ;;  %v4439_v35 = vpop.f32.mrb[7].mxu0 }
 0x44b   :  { %4461 = vmatmul.mubr.msk.bf16.vlgmr.msra.gmra.mrb[12].mxu0 %vm152_vm2, %v271_v34 }
 0x44c   :  { %4472 = vmatprep.mubr.msk.bf16.mxu0 %vm4906_vm0, %v4905_v0 }
 0x44e   :  { %v387_v36 = vpop.f32.mrb[8].mxu0 }
 0x44f   :  { %v4450_v37 = vpop.f32.mrb[9].mxu0 }
 0x450   :  { %v390_v39 = vpop.f32.mrb[10].mxu0 }
 0x451   :  { %v394_v40 = vpack.c.bf16 %v390_v39, %v387_v36  ;;  %v4451_v41 = vpop.f32.mrb[11].mxu0 }
 0x453   :  { %4455 = vmatmul.mubr.msk.bf16.vlgmr.msra.gmra.mrb[8].mxu1 %vm152_vm2, %v394_v40 }
 0x454   :  { %4465 = vmatpush3.bf16.xpose.msra.mxu1 %v498_v42  ;;  %4466 = vmatprep.mubr.msk.bf16.mxu1 %vm4906_vm0, %v4905_v0 }
 0x455   :  { %4476 = vmatprep.subr.bf16.mxu1 %v4905_v0 }
 0x45b   :  { %4467 = vmatmul.mubr.msk.bf16.vlgmr.msra.gmra.mrb[12].mxu1 %vm152_vm2, %v491_v43 }
 0x45c   :  { %4478 = vmatprep.mubr.msk.bf16.mxu1 %vm4906_vm0, %v4905_v0  ;;  %4477 = vmatpush3.bf16.msra.mxu1 %v616_v22 }
 0x45d   :  { %4488 = vmatprep.subr.bf16.mxu1 %v4905_v0 }
 0x51e   :  { %v483_v44 = vpop.f32.mrb[12].mxu0 }
 0x51f   :  { %v4462_v45 = vpop.f32.mrb[13].mxu0 }
 0x520   :  { %v486_v46 = vpop.f32.mrb[14].mxu0 }
 0x521   :  { %v4463_v47 = vpop.f32.mrb[15].mxu0 }
 0x526   :  { %v436_v48 = vpop.f32.mrb[8].mxu1 }
 0x527   :  { %v5060_v49 = vadd.f32 %v483_v44, %v436_v48  ;;  %v4456_v50 = vpop.f32.mrb[9].mxu1 }
 0x528   :  { %v439_v51 = vpop.f32.mrb[10].mxu1 }
 0x529   :  { %v5062_v52 = vadd.f32 %v486_v46, %v439_v51  ;;  %v4457_v53 = vpop.f32.mrb[11].mxu1 }
 0x52e   :  { %v534_v54 = vpop.f32.mrb[12].mxu1 }
 0x52f   :  { %v535_v55 = vadd.f32 %v534_v54, %v5007_v30  ;;  %v4468_v56 = vpop.f32.mrb[13].mxu1 }
 0x530   :  { %v537_v57 = vpop.f32.mrb[14].mxu1 }
 0x531   :  { %v538_v58 = vadd.f32 %v537_v57, %v5009_v32  ;;  %v4469_v59 = vpop.f32.mrb[15].mxu1  ;;  %v541_v60 = vsel %vm200_vm5, %v535_v55, -inf }
 0x532   :  { %542 = vmax.xlane.f32.xlu1 %v541_v60 }
 0x533   :  { %v544_v61 = vsel %vm200_vm5, %v538_v58, -inf }
 0x534   :  { %545 = vmax.xlane.f32.xlu0 %v544_v61 }
 0x5bf   :  { %v543_v62 = vpop.xlane.xlu1 %542 }
 0x5c0   :  { %v547_v63 = vsub.f32 %v535_v55, %v543_v62 }
 0x5c1   :  { %v546_v1 = vpop.xlane.xlu0 %545 }
 0x5c2   :  { %v549_v2 = vmul.f32 1.442695, %v547_v63  ;;  %v548_v3 = vsub.f32 %v538_v58, %v546_v1 }
 0x5c4   :  { %4823 = vpow2.f32 %v549_v2  ;;  %v551_v4 = vmul.f32 1.442695, %v548_v3 }
 0x5c6   :  { %4825 = vpow2.f32 %v551_v4 }
 0x5ce   :  { %v4824_v5 = vpop.eup %4823 }
 0x5cf   :  { %v553_v6 = vsel %vm200_vm5, %v4824_v5, 0.0 }
 0x5d0   :  { %v4826_v7 = vpop.eup %4825  ;;  %554 = vadd.xlane.f32.xlu0 %v553_v6 }
 0x5d1   :  { %v556_v8 = vsel %vm200_vm5, %v4826_v7, 0.0 }
 0x5d2   :  { %557 = vadd.xlane.f32.xlu1 %v556_v8 }
 0x5e3   :  { %663 = vrot.lane.b32.xlu1 %v4978_v15, %s4915_s14 }
 0x5e6   :  { %564 = vrot.lane.b32.xlu0 %v4978_v15, %s4916_s15 }
 0x5e7   :  { %661 = vrot.lane.b32.xlu1 %v4980_v16, %s4917_s16 }
 0x65d   :  { %v555_v9 = vpop.xlane.xlu0 %554 }
 0x65e   :  { %4827 = vrcp.f32 %v555_v9 }
 0x65f   :  { %v558_v10 = vpop.xlane.xlu1 %557 }
 0x660   :  { %4829 = vrcp.f32 %v558_v10 }
 0x661   :  { %v565_v11 = vpop.permute.xlu0 %564 }
 0x662   :  { %4471 = vmatpush3.bf16.msra.mxu0 %v565_v11 }
 0x663   :  { %4482 = vmatprep.subr.bf16.mxu0 %v4905_v0  ;;  %v664_v18 = vpop.permute.xlu1 %663 }
 0x664   :  { %v669_v20 = vsel %vm152_vm2, %v664_v18, 0  ;;  %v4879_v18 = vld [vmem:[%s5919_s0] sm:$0xff] }
 0x667   :  { %v662_v16 = vpop.permute.xlu1 %661 }
 0x668   :  { %v4828_v12 = vpop.eup %4827 }
 0x669   :  { %v561_v14 = vmul.f32 %v4828_v12, %v4824_v5 }
 0x66a   :  { %v4830_v13 = vpop.eup %4829 }
 0x66b   :  { %v562_v17 = vmul.f32 %v4830_v13, %v4826_v7  ;;  %v3983_v7 = vld [vmem:[%s5923_s4 + $0x1] ss:$0 sm:$0xff] }
 0x66d   :  { %v563_v19 = vpack.c.bf16 %v562_v17, %v561_v14 }
 0x66f   :  { %4473 = vmatmul.mubr.msk.bf16.vlgmr.msra.gmra.mrb[16].mxu0 %vm200_vm5, %v563_v19 }
 0x670   :  { %4483 = vmatpush3.bf16.xpose.msra.mxu0 %v669_v20  ;;  %4484 = vmatprep.mubr.msk.bf16.mxu0 %vm4906_vm0, %v4905_v0 }
 0x671   :  { %4494 = vmatprep.subr.bf16.mxu0 %v4905_v0 }
 0x677   :  { %4485 = vmatmul.mubr.msk.bf16.vlgmr.msra.gmra.mrb[20].mxu0 %vm152_vm2, %v662_v16  ;;  %v4880_v16 = vld [vmem:[%s5919_s0 + $0x8] sm:$0xff] }
 0x678   :  { %4496 = vmatprep.mubr.msk.bf16.mxu0 %vm4906_vm0, %v4905_v0 }
 0x742   :  { %v604_v24 = vpop.f32.mrb[16].mxu0 }
 0x743   :  { %v4474_v25 = vpop.f32.mrb[17].mxu0 }
 0x744   :  { %v607_v26 = vpop.f32.mrb[18].mxu0 }
 0x745   :  { %v611_v28 = vpack.c.bf16 %v607_v26, %v604_v24  ;;  %v4475_v29 = vpop.f32.mrb[19].mxu0 }
 0x747   :  { %4479 = vmatmul.mubr.msk.bf16.vlgmr.msra.gmra.mrb[16].mxu1 %vm152_vm2, %v611_v28 }
 0x748   :  { %4490 = vmatprep.mubr.msk.bf16.mxu1 %vm4906_vm0, %v4905_v0 }
 0x74a   :  { %v705_v31 = vpop.f32.mrb[20].mxu0 }
 0x74b   :  { %v706_v33 = vadd.f32 %v705_v31, %v5007_v30  ;;  %v4486_v34 = vpop.f32.mrb[21].mxu0 }
 0x74c   :  { %v708_v35 = vpop.f32.mrb[22].mxu0 }
 0x74d   :  { %v709_v36 = vadd.f32 %v708_v35, %v5009_v32  ;;  %v4487_v37 = vpop.f32.mrb[23].mxu0  ;;  %v712_v38 = vsel %vm200_vm5, %v706_v33, -inf }
 0x74e   :  { %713 = vmax.xlane.f32.xlu0 %v712_v38  ;;  %v4629_v37 = vld [vmem:[%s5920_s1 + $0x4] ss:$84 sps:$4 sm:$0xff]   ;;  %v4632_v38 = vld [vmem:[%s5920_s1 + $0xc] ss:$84 sps:$4 sm:$0xff]  }
 0x74f   :  { %v715_v39 = vsel %vm200_vm5, %v709_v36, -inf }
 0x750   :  { %716 = vmax.xlane.f32.xlu1 %v715_v39  ;;  %v4627_v39 = vld [vmem:[%s5920_s1] ss:$84 sps:$4 sm:$0xff]  }
 0x761   :  { %735 = vrot.lane.b32.xlu1 %v4978_v15, %s4918_s19 }
 0x7db   :  { %v714_v40 = vpop.xlane.xlu0 %713 }
 0x7dc   :  { %v718_v41 = vsub.f32 %v706_v33, %v714_v40  ;;  %v4630_v40 = vld [vmem:[%s5920_s1 + $0x8] ss:$84 sps:$4 sm:$0xff]  }
 0x7dd   :  { %v717_v42 = vpop.xlane.xlu1 %716 }
 0x7de   :  { %v720_v43 = vmul.f32 1.442695, %v718_v41  ;;  %v719_v44 = vsub.f32 %v709_v36, %v717_v42  ;;  %v4635_v41 = vld [vmem:[%s5920_s1 + $0xac] ss:$84 sps:$4 sm:$0xff]   ;;  %v4638_v42 = vld [vmem:[%s5920_s1 + $0xb4] ss:$84 sps:$4 sm:$0xff]  }
 0x7e0   :  { %4831 = vpow2.f32 %v720_v43  ;;  %v722_v45 = vmul.f32 1.442695, %v719_v44  ;;  %v4633_v43 = vld [vmem:[%s5920_s1 + $0xa8] ss:$84 sps:$4 sm:$0xff]   ;;  %v4636_v44 = vld [vmem:[%s5920_s1 + $0xb0] ss:$84 sps:$4 sm:$0xff]  }
 0x7e1   :  { %v736_v46 = vpop.permute.xlu1 %735 }
 0x7e2   :  { %4833 = vpow2.f32 %v722_v45  ;;  %4489 = vmatpush3.bf16.msra.mxu1 %v736_v46  ;;  %v4919_v45 = vmov 0   ;;  %v4641_v46 = vld [vmem:[%s5920_s1 + $0x14] ss:$84 sps:$4 sm:$0xff]  }
 0x7e3   :  { %1167 = vmatprep.subr.bf16.mxu1 %v4629_v37  ;;  %v4684_v37 = vld [vmem:[%s5921_s2 + $0xd0] sm:$0xff]  }
 0x7ea   :  { %v4832_v47 = vpop.eup %4831 }
 0x7eb   :  { %v724_v48 = vsel %vm200_vm5, %v4832_v47, 0.0 }
 0x7ec   :  { %v4834_v50 = vpop.eup %4833  ;;  %725 = vadd.xlane.f32.xlu0 %v724_v48 }
 0x7ed   :  { %v727_v51 = vsel %vm200_vm5, %v4834_v50, 0.0 }
 0x7f0   :  { %728 = vadd.xlane.f32.xlu0 %v727_v51 }
 0x81a   :  { %v652_v53 = vpop.f32.mrb[16].mxu1 }
 0x81b   :  { %v659_v15 = vadd.f32 %v652_v53, %v5060_v49  ;;  %v4480_v54 = vpop.f32.mrb[17].mxu1  ;;  %v79_v49 = vld [vmem:[%s5920_s1 + $0x140] sm:$0xf] }
 0x81c   :  { %v655_v55 = vpop.f32.mrb[18].mxu1  ;;  %v787_v2 = vsel %vm398_vm6, %v79_v49, 0  ;;  %v4639_v49 = vld [vmem:[%s5920_s1 + $0x10] ss:$84 sps:$4 sm:$0xff]  }
 0x81d   :  { %v660_v56 = vadd.f32 %v655_v55, %v5062_v52  ;;  %v4481_v57 = vpop.f32.mrb[19].mxu1  ;;  %4495 = vmatpush3.bf16.msra.mxu0 %v787_v2  ;;  %v4642_v2 = vld [vmem:[%s5920_s1 + $0x18] ss:$84 sps:$4 sm:$0xff]  }
 0x81e   :  { %1210 = vmatprep.subr.bf16.mxu0 %v4632_v38  ;;  %v3984_v57 = vld [vmem:[%s5923_s4 + $0x15] ss:$0 sm:$0xff] }
 0x81f   :  { %v4685_v38 = vld [vmem:[%s5921_s2 + $0x10] sm:$0xff]  }
 0x879   :  { %v726_v58 = vpop.xlane.xlu0 %725 }
 0x87a   :  { %4835 = vrcp.f32 %v726_v58 }
 0x87d   :  { %v729_v59 = vpop.xlane.xlu0 %728 }
 0x87e   :  { %4837 = vrcp.f32 %v729_v59 }
 0x884   :  { %v4836_v60 = vpop.eup %4835 }
 0x885   :  { %v732_v62 = vmul.f32 %v4836_v60, %v4832_v47  ;;  %v4644_v47 = vld [vmem:[%s5920_s1 + $0x1c] ss:$84 sps:$4 sm:$0xff]  }
 0x888   :  { %v4838_v61 = vpop.eup %4837 }
 0x889   :  { %v733_v63 = vmul.f32 %v4838_v61, %v4834_v50  ;;  %v3985_v61 = vld [vmem:[%s5923_s4 + $0x16] ss:$0 sm:$0xff] }
 0x88b   :  { %v734_v1 = vpack.c.bf16 %v733_v63, %v732_v62 }
 0x88d   :  { %4491 = vmatmul.mubr.msk.bf16.vlgmr.msra.gmra.mrb[20].mxu1 %vm200_vm5, %v734_v1 }
 0x88e   :  { %1168 = vmatpush1.bf16.msra.mxu1 %v4627_v39  ;;  %1199 = vmatprep.mubr.bf16.mxu1 %v4919_v45  ;;  %v4686_v39 = vld [vmem:[%s5921_s2 + $0x90] sm:$0xff]  }
 0x88f   :  { %1169 = vmatprep.subr.bf16.mxu1 %v4635_v41  ;;  %v4688_v41 = vld [vmem:[%s5921_s2 + $0xd8] sm:$0xff]  }
 0x892   :  { %1170 = vmatpush1.bf16.msra.mxu1 %v4633_v43  ;;  %v4690_v43 = vld [vmem:[%s5921_s2 + $0x98] sm:$0xff]  }
 0x893   :  { %1253 = vmatprep.subr.bf16.mxu1 %v4641_v46  ;;  %v4693_v46 = vld [vmem:[%s5921_s2 + $0x20] sm:$0xff]  }
 0x960   :  { %v775_v52 = vpop.f32.mrb[20].mxu1 }
 0x961   :  { %v4492_v3 = vpop.f32.mrb[21].mxu1 }
 0x962   :  { %v778_v4 = vpop.f32.mrb[22].mxu1  ;;  %v4647_v3 = vld [vmem:[%s5920_s1 + $0xbc] ss:$84 sps:$4 sm:$0xff]  }
 0x963   :  { %v782_v5 = vpack.c.bf16 %v778_v4, %v775_v52  ;;  %v4493_v6 = vpop.f32.mrb[23].mxu1  ;;  %v4650_v4 = vld [vmem:[%s5920_s1 + $0xc4] ss:$84 sps:$4 sm:$0xff]  }
 0x964   :  { %v4648_v6 = vld [vmem:[%s5920_s1 + $0xc0] ss:$84 sps:$4 sm:$0xff]  }
 0x965   :  { %4497 = vmatmul.mubr.msk.bf16.vlgmr.msra.gmra.mrb[24].mxu0 %vm152_vm2, %v782_v5  ;;  %v4645_v5 = vld [vmem:[%s5920_s1 + $0xb8] ss:$84 sps:$4 sm:$0xff]  }
 0x966   :  { %1211 = vmatpush1.bf16.msra.mxu0 %v4630_v40  ;;  %1242 = vmatprep.mubr.bf16.mxu0 %v4919_v45  ;;  %v4687_v40 = vld [vmem:[%s5921_s2 + $0x58] sm:$0xff]  }
 0x967   :  { %1212 = vmatprep.subr.bf16.mxu0 %v4638_v42  ;;  %v4689_v42 = vld [vmem:[%s5921_s2 + $0x18] sm:$0xff]  }
 0x96a   :  { %1213 = vmatpush1.bf16.msra.mxu0 %v4636_v44  ;;  %v4691_v44 = vld [vmem:[%s5921_s2 + $0x60] sm:$0xff]  }
 0x96b   :  { %1296 = vmatprep.subr.bf16.mxu0 %v4644_v47  ;;  %v4694_v47 = vld [vmem:[%s5921_s2 + $0xa0] sm:$0xff]  }
 0xa38   :  { %v823_v8 = vpop.f32.mrb[24].mxu0 }
 0xa39   :  { %v830_v9 = vadd.f32 %v823_v8, %v659_v15  ;;  %v4498_v10 = vpop.f32.mrb[25].mxu0  ;;  %v4656_v8 = vld [vmem:[%s5920_s1 + $0x2c] ss:$84 sps:$4 sm:$0xff]  }
 0xa3a   :  { %v826_v11 = vpop.f32.mrb[26].mxu0  ;;  %v4654_v10 = vld [vmem:[%s5920_s1 + $0x28] ss:$84 sps:$4 sm:$0xff]  }
 0xa3b   :  { %v838_v12 = vadd.f32 %v3983_v7, %v830_v9  ;;  %v831_v13 = vadd.f32 %v826_v11, %v660_v56  ;;  %v4499_v14 = vpop.f32.mrb[27].mxu0  ;;  %v4651_v9 = vld [vmem:[%s5920_s1 + $0x20] ss:$84 sps:$4 sm:$0xff]  }
 0xa3c   :  { %v4659_v11 = vld [vmem:[%s5920_s1 + $0xcc] ss:$84 sps:$4 sm:$0xff]   ;;  %v4660_v14 = vld [vmem:[%s5920_s1 + $0xd0] ss:$84 sps:$4 sm:$0xff]  }
 0xa3d   :  { %v839_v17 = vadd.f32 %v3983_v7, %v831_v13  ;;  %v840_v19 = vadd.f32 %v4879_v18, %v838_v12  ;;  %v4653_v7 = vld [vmem:[%s5920_s1 + $0x24] ss:$84 sps:$4 sm:$0xff]   ;;  %v4662_v12 = vld [vmem:[%s5920_s1 + $0xd4] ss:$84 sps:$4 sm:$0xff]   ;;  %v4668_v18 = vld [vmem:[%s5920_s1 + $0x3c] ss:$84 sps:$4 sm:$0xff]  }
 0xa3e   :  { %v4657_v13 = vld [vmem:[%s5920_s1 + $0xc8] ss:$84 sps:$4 sm:$0xff]  }
 0xa3f   :  { %v844_v20 = vsel %vm100_vm1, %v840_v19, 0.0  ;;  %v841_v21 = vadd.f32 %v4880_v16, %v839_v17  ;;  %v4665_v17 = vld [vmem:[%s5920_s1 + $0x34] ss:$84 sps:$4 sm:$0xff]   ;;  %v4671_v16 = vld [vmem:[%s5920_s1 + $0xdc] ss:$84 sps:$4 sm:$0xff]  }
 0xa40   :  { %845 = vadd.xlane.f32.xlu0 %v844_v20  ;;  %v4666_v20 = vld [vmem:[%s5920_s1 + $0x38] ss:$84 sps:$4 sm:$0xff]  }
 0xa41   :  { %v847_v22 = vsel %vm100_vm1, %v841_v21, 0.0 }
 0xa44   :  { %848 = vadd.xlane.f32.xlu0 %v847_v22  ;;  %v4669_v22 = vld [vmem:[%s5920_s1 + $0xd8] ss:$84 sps:$4 sm:$0xff]  }
 0xacd   :  { %v846_v24 = vpop.xlane.xlu0 %845 }
 0xace   :  { %v851_v25 = vmul.f32 0.03125, %v846_v24  ;;  %v4672_v24 = vld [vmem:[%s5920_s1 + $0xe0] ss:$84 sps:$4 sm:$0xff]  }
 0xad0   :  { %v853_v26 = vsub.f32 %v840_v19, %v851_v25  ;;  %v4663_v19 = vld [vmem:[%s5920_s1 + $0x30] ss:$84 sps:$4 sm:$0xff]  }
 0xad1   :  { %v849_v28 = vpop.xlane.xlu0 %848  ;;  %v4675_v25 = vld [vmem:[%s5921_s2 + $0x40] sm:$0xff]  }
 0xad2   :  { %v852_v29 = vmul.f32 0.03125, %v849_v28  ;;  %v855_v31 = vmul.f32 %v853_v26, %v853_v26  ;;  %v4677_v28 = vld [vmem:[%s5921_s2] sm:$0xff]  }
 0xad4   :  { %v854_v33 = vsub.f32 %v841_v21, %v852_v29  ;;  %v857_v34 = vsel %vm100_vm1, %v855_v31, 0.0  ;;  %v4674_v21 = vld [vmem:[%s5920_s1 + $0xe4] ss:$84 sps:$4 sm:$0xff]   ;;  %v4679_v31 = vld [vmem:[%s5921_s2 + $0x48] sm:$0xff]  }
 0xad5   :  { %858 = vadd.xlane.f32.xlu0 %v857_v34  ;;  %v4678_v29 = vld [vmem:[%s5921_s2 + $0x80] sm:$0xff]   ;;  %v4681_v34 = vld [vmem:[%s5921_s2 + $0x8] sm:$0xff]  }
 0xad6   :  { %v856_v35 = vmul.f32 %v854_v33, %v854_v33 }
 0xad8   :  { %v860_v36 = vsel %vm100_vm1, %v856_v35, 0.0  ;;  %v4682_v35 = vld [vmem:[%s5921_s2 + $0x88] sm:$0xff]  }
 0xad9   :  { %861 = vadd.xlane.f32.xlu0 %v860_v36  ;;  %v4683_v36 = vld [vmem:[%s5921_s2 + $0x50] sm:$0xff]  }
 0xb62   :  { %v859_v48 = vpop.xlane.xlu0 %858 }
 0xb63   :  { %v863_v50 = vmul.f32 0.03125, %v859_v48  ;;  %v4695_v48 = vld [vmem:[%s5921_s2 + $0x68] sm:$0xff]  }
 0xb65   :  { %v865_v51 = vadd.f32 1e-05, %v863_v50  ;;  %v4696_v50 = vld [vmem:[%s5921_s2 + $0xe8] sm:$0xff]  }
 0xb66   :  { %v862_v53 = vpop.xlane.xlu0 %861 }
 0xb67   :  { %4839 = vrsqrt.f32 %v865_v51  ;;  %v864_v15 = vmul.f32 0.03125, %v862_v53  ;;  %v4697_v51 = vld [vmem:[%s5921_s2 + $0x28] sm:$0xff]  }
 0xb68   :  { %v4698_v53 = vld [vmem:[%s5921_s2 + $0xa8] sm:$0xff]  }
 0xb69   :  { %v866_v54 = vadd.f32 1e-05, %v864_v15  ;;  %v4699_v15 = vld [vmem:[%s5921_s2 + $0x70] sm:$0xff]  }
 0xb6b   :  { %4841 = vrsqrt.f32 %v866_v54  ;;  %v4700_v54 = vld [vmem:[%s5921_s2 + $0xf0] sm:$0xff]  }
 0xb71   :  { %v4840_v55 = vpop.eup %4839 }
 0xb72   :  { %v869_v56 = vmul.f32 %v4840_v55, %v853_v26  ;;  %v4676_v26 = vld [vmem:[%s5921_s2 + $0xc0] sm:$0xff]   ;;  %v4701_v55 = vld [vmem:[%s5921_s2 + $0x30] sm:$0xff]  }
 0xb74   :  { %v877_v59 = vmul.f32 %v3984_v57, %v869_v56  ;;  %v4702_v56 = vld [vmem:[%s5921_s2 + $0xb0] sm:$0xff]  }
 0xb75   :  { %v4842_v58 = vpop.eup %4841 }
 0xb76   :  { %v870_v60 = vmul.f32 %v4842_v58, %v854_v33  ;;  %v5160_v63 = vadd.f32 %v3985_v61, %v877_v59  ;;  %v4680_v33 = vld [vmem:[%s5921_s2 + $0xc8] sm:$0xff]   ;;  %v4704_v58 = vld [vmem:[%s5921_s2 + $0xf8] sm:$0xff]  }
 0xb77   :  { %v4705_v59 = vld [vmem:[%s5921_s2 + $0x38] sm:$0xff]  }
 0xb78   :  { %v878_v62 = vmul.f32 %v3984_v57, %v870_v60  ;;  %v4703_v57 = vld [vmem:[%s5921_s2 + $0x78] sm:$0xff]  }
 0xb79   :  { %v4706_v60 = vld [vmem:[%s5921_s2 + $0xb8] sm:$0xff]  }
 0xb7a   :  { %v5162_v1 = vadd.f32 %v3985_v61, %v878_v62  ;;  %v4707_v61 = vld [vmem:[%s5921_s2 + $0x140] sm:$0xff]  }
 0xb7b   :  { %v4708_v62 = vld [vmem:[%s5921_s2 + $0x1c0] sm:$0xff]  }
 0xb7c   :  { %v5172_v52 = vpack.c.bf16 %v5162_v1, %v5160_v63 }
 0xb7e   :  { %4018 = vmatmul.mubr.msk.bf16.vlgmr.msra.gmra.mrb[24].mxu1 %vm100_vm1, %v5172_v52  ;;  %4019 = vmatmul.mubr.msk.bf16.vlgmr.msra.gmra.mrb[28].mxu0 %vm100_vm1, %v5172_v52 }
 0xb7f   :  { %1254 = vmatpush1.bf16.msra.mxu1 %v4639_v49  ;;  %1297 = vmatpush1.bf16.msra.mxu0 %v4642_v2  ;;  %v950_v49 = vsub.s32 6, %v4999_v23  ;;  %v5362_v2 = vld [vmem:[%s5923_s4 + $0xc] sm:$0xff] }
 0xb80   :  { %1255 = vmatprep.subr.bf16.mxu1 %v4647_v3  ;;  %1298 = vmatprep.subr.bf16.mxu0 %v4650_v4  ;;  %v926_v3 = vsub.s32 0, %v4999_v23  ;;  %v934_v4 = vsub.s32 2, %v4999_v23 }
 0xb81   :  { %1285 = vmatprep.mubr.bf16.mxu1 %v4919_v45  ;;  %1328 = vmatprep.mubr.bf16.mxu0 %v4919_v45 }
 0xb83   :  { %1256 = vmatpush1.bf16.msra.mxu1 %v4645_v5  ;;  %1299 = vmatpush1.bf16.msra.mxu0 %v4648_v6  ;;  %v920_v5 = vld [vmem:[%s5923_s4 + $0x4] sm:$0xff]  ;;  %v930_v6 = vsub.s32 1, %v4999_v23 }
 0xb84   :  { %1339 = vmatprep.subr.bf16.mxu1 %v4653_v7  ;;  %1382 = vmatprep.subr.bf16.mxu0 %v4656_v8  ;;  %v938_v7 = vsub.s32 3, %v4999_v23  ;;  %v927_v8 = vrot.slane %v920_v5, %v926_v3 }
 0xb86   :  { %4020 = vmatmul.mubr.msk.bf16.vlgmr.msra.gmra.mrb[28].mxu1 %vm100_vm1, %v5172_v52  ;;  %4021 = vmatmul.mubr.msk.bf16.vlgmr.msra.gmra.mrb[32].mxu0 %vm100_vm1, %v5172_v52 }
 0xb87   :  { %1340 = vmatpush1.bf16.msra.mxu1 %v4651_v9  ;;  %1383 = vmatpush1.bf16.msra.mxu0 %v4654_v10  ;;  %v935_v9 = vrot.slane %v920_v5, %v934_v4  ;;  %v931_v10 = vrot.slane %v920_v5, %v930_v6 }
 0xb88   :  { %1341 = vmatprep.subr.bf16.mxu1 %v4659_v11  ;;  %1384 = vmatprep.subr.bf16.mxu0 %v4662_v12  ;;  %v939_v11 = vrot.slane %v920_v5, %v938_v7  ;;  %v942_v12 = vsub.s32 4, %v4999_v23 }
 0xb89   :  { %1371 = vmatprep.mubr.bf16.mxu1 %v4919_v45  ;;  %1414 = vmatprep.mubr.bf16.mxu0 %v4919_v45 }
 0xb8b   :  { %1342 = vmatpush1.bf16.msra.mxu1 %v4657_v13  ;;  %1385 = vmatpush1.bf16.msra.mxu0 %v4660_v14 }
 0xb8c   :  { %1425 = vmatprep.subr.bf16.mxu1 %v4665_v17  ;;  %1468 = vmatprep.subr.bf16.mxu0 %v4668_v18  ;;  %v946_v17 = vsub.s32 5, %v4999_v23  ;;  %v954_v18 = vsub.s32 7, %v4999_v23  ;;  %v3869_v23 = vld [vmem:[%s5922_s3] sm:$0xff]  ;;  %s4881_s3 = scalar_lea.vmem %s3960_s13, 32 }
 0xb8d   :  { %p4882_p0 = scmp.ne.s32.totalorder %s3960_s13, %s4881_s3  ;;  %p4887_p2 = scmp.lt.s32.totalorder %s4881_s3, %s4881_s3 }
 0xb8e   :  { %4022 = vmatmul.mubr.msk.bf16.vlgmr.msra.gmra.mrb[32].mxu1 %vm100_vm1, %v5172_v52  ;;  %4023 = vmatmul.mubr.msk.bf16.vlgmr.msra.gmra.mrb[36].mxu0 %vm100_vm1, %v5172_v52 }
 0xb8f   :  { %1426 = vmatpush1.bf16.msra.mxu1 %v4663_v19  ;;  %1469 = vmatpush1.bf16.msra.mxu0 %v4666_v20  ;;  %p4888_p3 = por %p4887_p2, %p4886_p1 }
 0xb90   :  { %1427 = vmatprep.subr.bf16.mxu1 %v4671_v16  ;;  %1470 = vmatprep.subr.bf16.mxu0 %v4674_v21 }
 0xb91   :  { %1457 = vmatprep.mubr.bf16.mxu1 %v4919_v45  ;;  %1500 = vmatprep.mubr.bf16.mxu0 %v4919_v45  ;;  %v4692_v45 = vld [vmem:[%s5921_s2 + $0xe0] sm:$0xff]   ;;  %p4889_p4 = pnand %p4888_p3, %p4882_p0 }
 0xb93   :  { %1428 = vmatpush1.bf16.msra.mxu1 %v4669_v22  ;;  %1471 = vmatpush1.bf16.msra.mxu0 %v4672_v24 }
 0xb94   :  { %4208 = vmatprep.subr.bf16.mxu1 %v4675_v25  ;;  %4230 = vmatprep.subr.bf16.mxu0 %v4676_v26 }
 0xb96   :  { %4024 = vmatmul.mubr.msk.bf16.vlgmr.msra.gmra.mrb[36].mxu1 %vm100_vm1, %v5172_v52  ;;  %4025 = vmatmul.mubr.msk.bf16.vlgmr.msra.gmra.mrb[40].mxu0 %vm100_vm1, %v5172_v52  ;;  %v5365_v52 = vrot.slane %v5362_v2, %v950_v49 }
 0xb97   :  { %4209 = vmatpush3.bf16.msra.mxu1 %v4677_v28  ;;  %4231 = vmatpush3.bf16.msra.mxu0 %v4678_v29 }
 0xb98   :  { %4210 = vmatprep.subr.bf16.mxu1 %v4679_v31  ;;  %4232 = vmatprep.subr.bf16.mxu0 %v4680_v33 }
 0xb9b   :  { %4211 = vmatpush3.bf16.msra.mxu1 %v4681_v34  ;;  %4233 = vmatpush3.bf16.msra.mxu0 %v4682_v35  ;;  %v943_v34 = vrot.slane %v920_v5, %v942_v12  ;;  %v951_v35 = vrot.slane %v920_v5, %v950_v49  ;;  %v959_v49 = vrot.slane %v5362_v2, %v926_v3 }
 0xb9c   :  { %4212 = vmatprep.subr.bf16.mxu1 %v4683_v36  ;;  %4234 = vmatprep.subr.bf16.mxu0 %v4684_v37 }
 0xb9f   :  { %4213 = vmatpush3.bf16.msra.mxu1 %v4685_v38  ;;  %4235 = vmatpush3.bf16.msra.mxu0 %v4686_v39  ;;  %v947_v38 = vrot.slane %v920_v5, %v946_v17  ;;  %v955_v39 = vrot.slane %v920_v5, %v954_v18 }
 0xba0   :  { %4214 = vmatprep.subr.bf16.mxu1 %v4687_v40  ;;  %4236 = vmatprep.subr.bf16.mxu0 %v4688_v41 }
 0xba3   :  { %4215 = vmatpush3.bf16.msra.mxu1 %v4689_v42  ;;  %4237 = vmatpush3.bf16.msra.mxu0 %v4690_v43 }
 0xba4   :  { %4216 = vmatprep.subr.bf16.mxu1 %v4691_v44  ;;  %4238 = vmatprep.subr.bf16.mxu0 %v4692_v45 }
 0xba7   :  { %4217 = vmatpush3.bf16.msra.mxu1 %v4693_v46  ;;  %4239 = vmatpush3.bf16.msra.mxu0 %v4694_v47 }
 0xba8   :  { %4218 = vmatprep.subr.bf16.mxu1 %v4695_v48  ;;  %4240 = vmatprep.subr.bf16.mxu0 %v4696_v50 }
 0xbab   :  { %4219 = vmatpush3.bf16.msra.mxu1 %v4697_v51  ;;  %4241 = vmatpush3.bf16.msra.mxu0 %v4698_v53 }
 0xbac   :  { %4220 = vmatprep.subr.bf16.mxu1 %v4699_v15  ;;  %4242 = vmatprep.subr.bf16.mxu0 %v4700_v54 }
 0xbaf   :  { %4221 = vmatpush3.bf16.msra.mxu1 %v4701_v55  ;;  %4243 = vmatpush3.bf16.msra.mxu0 %v4702_v56  ;;  %v4709_v55 = vld [vmem:[%s5921_s2 + $0x100] sm:$0xff]  }
 0xbb0   :  { %4222 = vmatprep.subr.bf16.mxu1 %v4703_v57  ;;  %4244 = vmatprep.subr.bf16.mxu0 %v4704_v58  ;;  %v4710_v56 = vld [vmem:[%s5921_s2 + $0x180] sm:$0xff]  }
 0xbb3   :  { %4223 = vmatpush3.bf16.msra.mxu1 %v4705_v59  ;;  %4245 = vmatpush3.bf16.msra.mxu0 %v4706_v60 }
 0xbb4   :  { %4252 = vmatprep.subr.bf16.mxu1 %v4707_v61  ;;  %4274 = vmatprep.subr.bf16.mxu0 %v4708_v62  ;;  %v4711_v61 = vld [vmem:[%s5921_s2 + $0x148] sm:$0xff]  }
 0xbb5   :  { %v4712_v62 = vld [vmem:[%s5921_s2 + $0x1c8] sm:$0xff]  }
 0xc51   :  { %v1201_v13 = vpop.f32.mrb[24].mxu1  ;;  %v1244_v14 = vpop.f32.mrb[28].mxu0 }
 0xc52   :  { %v1202_v19 = vadd.f32 %v1201_v13, %v927_v8  ;;  %v1245_v20 = vadd.f32 %v1244_v14, %v935_v9  ;;  %v1203_v16 = vpop.f32.mrb[25].mxu1  ;;  %v1246_v21 = vpop.f32.mrb[29].mxu0 }
 0xc53   :  { %v1204_v22 = vadd.f32 %v1203_v16, %v931_v10  ;;  %v1247_v24 = vadd.f32 %v1246_v21, %v939_v11  ;;  %v1205_v25 = vpop.f32.mrb[26].mxu1  ;;  %v1248_v26 = vpop.f32.mrb[30].mxu0  ;;  %v963_v16 = vrot.slane %v5362_v2, %v930_v6 }
 0xc54   :  { %v1206_v28 = vadd.f32 %v1205_v25, %v927_v8  ;;  %v1249_v29 = vadd.f32 %v1248_v26, %v935_v9  ;;  %v1207_v31 = vpop.f32.mrb[27].mxu1  ;;  %v1250_v33 = vpop.f32.mrb[31].mxu0  ;;  %v1511_v40 = vmax.f32 %v1202_v19, 0.0  ;;  %v1513_v41 = vmax.f32 %v1245_v20, 0.0 }
 0xc55   :  { %v1208_v36 = vadd.f32 %v1207_v31, %v931_v10  ;;  %v1251_v37 = vadd.f32 %v1250_v33, %v939_v11  ;;  %v1512_v44 = vmax.f32 %v1204_v22, 0.0  ;;  %v1514_v45 = vmax.f32 %v1247_v24, 0.0  ;;  %v4713_v22 = vld [vmem:[%s5921_s2 + $0x108] sm:$0xff]   ;;  %v4716_v31 = vld [vmem:[%s5921_s2 + $0x1d0] sm:$0xff]  }
 0xc56   :  { %v1527_v42 = vmax.f32 %v1206_v28, 0.0  ;;  %v1529_v43 = vmax.f32 %v1249_v29, 0.0  ;;  %v967_v11 = vrot.slane %v5362_v2, %v934_v4  ;;  %v4714_v4 = vld [vmem:[%s5921_s2 + $0x188] sm:$0xff]   ;;  %v971_v24 = vrot.slane %v5362_v2, %v938_v7  ;;  %v4715_v29 = vld [vmem:[%s5921_s2 + $0x150] sm:$0xff]  }
 0xc57   :  { %v1528_v46 = vmax.f32 %v1208_v36, 0.0  ;;  %v1530_v47 = vmax.f32 %v1251_v37, 0.0 }
 0xc58   :  { %v1543_v48 = vpack.c.bf16 %v1527_v42, %v1511_v40  ;;  %v1545_v50 = vpack.c.bf16 %v1529_v43, %v1513_v41  ;;  %v4717_v42 = vld [vmem:[%s5921_s2 + $0x110] sm:$0xff]  }
 0xc59   :  { %v1544_v51 = vpack.c.bf16 %v1528_v46, %v1512_v44  ;;  %v1546_v53 = vpack.c.bf16 %v1530_v47, %v1514_v45  ;;  %v1287_v15 = vpop.f32.mrb[28].mxu1  ;;  %v1330_v54 = vpop.f32.mrb[32].mxu0  ;;  %v4718_v43 = vld [vmem:[%s5921_s2 + $0x190] sm:$0xff]  }
 0xc5a   :  { %v1288_v57 = vadd.f32 %v1287_v15, %v943_v34  ;;  %v1331_v58 = vadd.f32 %v1330_v54, %v951_v35  ;;  %v1289_v59 = vpop.f32.mrb[29].mxu1  ;;  %v1332_v60 = vpop.f32.mrb[33].mxu0 }
 0xc5b   :  { %v1290_v5 = vadd.f32 %v1289_v59, %v947_v38  ;;  %v1333_v8 = vadd.f32 %v1332_v60, %v955_v39  ;;  %v1291_v9 = vpop.f32.mrb[30].mxu1  ;;  %v1334_v10 = vpop.f32.mrb[34].mxu0  ;;  %2622 = vmatprep.mubr.bf16.mxu1 %v1544_v51  ;;  %2663 = vmatprep.mubr.bf16.mxu0 %v1546_v53  ;;  %v975_v59 = vrot.slane %v5362_v2, %v942_v12 }
 0xc5c   :  { %v1292_v13 = vadd.f32 %v1291_v9, %v943_v34  ;;  %v1335_v14 = vadd.f32 %v1334_v10, %v951_v35  ;;  %v1293_v19 = vpop.f32.mrb[31].mxu1  ;;  %v1336_v20 = vpop.f32.mrb[35].mxu0  ;;  %2623 = vmatmul.mubr.bf16.vlgmr.msra.gmra.mrb[40].mxu1 %v1543_v48  ;;  %2664 = vmatmul.mubr.bf16.vlgmr.msra.gmra.mrb[44].mxu0 %v1545_v50  ;;  %v1515_v25 = vmax.f32 %v1288_v57, 0.0  ;;  %v1517_v26 = vmax.f32 %v1331_v58, 0.0  ;;  %v4719_v48 = vld [vmem:[%s5921_s2 + $0x158] sm:$0xff]  }
 0xc5d   :  { %v1294_v21 = vadd.f32 %v1293_v19, %v947_v38  ;;  %v1337_v3 = vadd.f32 %v1336_v20, %v955_v39  ;;  %4253 = vmatpush3.bf16.msra.mxu1 %v4709_v55  ;;  %4275 = vmatpush3.bf16.msra.mxu0 %v4710_v56  ;;  %v1516_v33 = vmax.f32 %v1290_v5, 0.0  ;;  %v1518_v34 = vmax.f32 %v1333_v8, 0.0  ;;  %v4720_v50 = vld [vmem:[%s5921_s2 + $0x1d8] sm:$0xff]  }
 0xc5e   :  { %v1531_v28 = vmax.f32 %v1292_v13, 0.0  ;;  %v1533_v6 = vmax.f32 %v1335_v14, 0.0  ;;  %4254 = vmatprep.subr.bf16.mxu1 %v4711_v61  ;;  %4276 = vmatprep.subr.bf16.mxu0 %v4712_v62  ;;  %v979_v60 = vrot.slane %v5362_v2, %v946_v17  ;;  %v4721_v5 = vld [vmem:[%s5921_s2 + $0x118] sm:$0xff]   ;;  %v987_v12 = vrot.slane %v5362_v2, %v954_v18  ;;  %v4724_v13 = vld [vmem:[%s5921_s2 + $0x1e0] sm:$0xff]  }
 0xc5f   :  { %v1532_v35 = vmax.f32 %v1294_v21, 0.0  ;;  %v1534_v36 = vmax.f32 %v1337_v3, 0.0 }
 0xc60   :  { %v5419_v37 = vpack.c.bf16 %v1531_v28, %v1515_v25  ;;  %v5421_v7 = vpack.c.bf16 %v1533_v6, %v1517_v26  ;;  %v4726_v25 = vld [vmem:[%s5921_s2 + $0x1a0] sm:$0xff]  }
 0xc61   :  { %v1548_v38 = vpack.c.bf16 %v1532_v35, %v1516_v33  ;;  %v1550_v39 = vpack.c.bf16 %v1534_v36, %v1518_v34  ;;  %4255 = vmatpush3.bf16.msra.mxu1 %v4713_v22  ;;  %4277 = vmatpush3.bf16.msra.mxu0 %v4714_v4  ;;  %v1373_v40 = vpop.f32.mrb[32].mxu1  ;;  %v1416_v41 = vpop.f32.mrb[36].mxu0  ;;  %v4728_v33 = vld [vmem:[%s5921_s2 + $0x1e8] sm:$0xff]  }
 0xc62   :  { %v1374_v44 = vadd.f32 %v1373_v40, %v959_v49  ;;  %v1417_v45 = vadd.f32 %v1416_v41, %v967_v11  ;;  %v1375_v46 = vpop.f32.mrb[33].mxu1  ;;  %v1418_v47 = vpop.f32.mrb[37].mxu0  ;;  %4256 = vmatprep.subr.bf16.mxu1 %v4715_v29  ;;  %4278 = vmatprep.subr.bf16.mxu0 %v4716_v31  ;;  %v4727_v31 = vld [vmem:[%s5921_s2 + $0x168] sm:$0xff]  }
 0xc63   :  { %v1376_v51 = vadd.f32 %v1375_v46, %v963_v16  ;;  %v1419_v53 = vadd.f32 %v1418_v47, %v971_v24  ;;  %v1377_v15 = vpop.f32.mrb[34].mxu1  ;;  %v1420_v54 = vpop.f32.mrb[38].mxu0  ;;  %2704 = vmatprep.mubr.bf16.mxu1 %v1548_v38  ;;  %2745 = vmatprep.mubr.bf16.mxu0 %v1550_v39  ;;  %v4730_v46 = vld [vmem:[%s5921_s2 + $0x1a8] sm:$0xff]  }
 0xc64   :  { %v1378_v55 = vadd.f32 %v1377_v15, %v959_v49  ;;  %v1421_v56 = vadd.f32 %v1420_v54, %v967_v11  ;;  %v1379_v57 = vpop.f32.mrb[35].mxu1  ;;  %v1422_v58 = vpop.f32.mrb[39].mxu0  ;;  %v4722_v49 = vld [vmem:[%s5921_s2 + $0x198] sm:$0xff]   ;;  %v1519_v8 = vmax.f32 %v1374_v44, 0.0  ;;  %v1521_v9 = vmax.f32 %v1417_v45, 0.0  ;;  %v4723_v11 = vld [vmem:[%s5921_s2 + $0x160] sm:$0xff]  }
 0xc65   :  { %v1380_v61 = vadd.f32 %v1379_v57, %v963_v16  ;;  %v1423_v62 = vadd.f32 %v1422_v58, %v971_v24  ;;  %4257 = vmatpush3.bf16.msra.mxu1 %v4717_v42  ;;  %4279 = vmatpush3.bf16.msra.mxu0 %v4718_v43  ;;  %v1520_v14 = vmax.f32 %v1376_v51, 0.0  ;;  %v1522_v19 = vmax.f32 %v1419_v53, 0.0  ;;  %v4725_v24 = vld [vmem:[%s5921_s2 + $0x120] sm:$0xff]   ;;  %v4729_v45 = vld [vmem:[%s5921_s2 + $0x128] sm:$0xff]   ;;  %v4732_v53 = vld [vmem:[%s5921_s2 + $0x1f0] sm:$0xff]  }
 0xc66   :  { %v1535_v10 = vmax.f32 %v1378_v55, 0.0  ;;  %v1537_v17 = vmax.f32 %v1421_v56, 0.0  ;;  %4258 = vmatprep.subr.bf16.mxu1 %v4719_v48  ;;  %4280 = vmatprep.subr.bf16.mxu0 %v4720_v50 }
 0xc67   :  { %v1536_v20 = vmax.f32 %v1380_v61, 0.0  ;;  %v1538_v16 = vmax.f32 %v1423_v62, 0.0  ;;  %v4733_v61 = vld [vmem:[%s5921_s2 + $0x130] sm:$0xff]  }
 0xc68   :  { %v5456_v21 = vpack.c.bf16 %v1535_v10, %v1519_v8  ;;  %v5458_v2 = vpack.c.bf16 %v1537_v17, %v1521_v9  ;;  %v4734_v62 = vld [vmem:[%s5921_s2 + $0x1b0] sm:$0xff]   ;;  %v4738_v8 = vld [vmem:[%s5921_s2 + $0x1b8] sm:$0xff]   ;;  %v4739_v9 = vld [vmem:[%s5921_s2 + $0x240] sm:$0xff]  }
 0xc69   :  { %v5460_v18 = vpack.c.bf16 %v1536_v20, %v1520_v14  ;;  %v5462_v3 = vpack.c.bf16 %v1538_v16, %v1522_v19  ;;  %4259 = vmatpush3.bf16.msra.mxu1 %v4721_v5  ;;  %4281 = vmatpush3.bf16.msra.mxu0 %v4722_v49  ;;  %v1459_v22 = vpop.f32.mrb[36].mxu1  ;;  %v1502_v4 = vpop.f32.mrb[40].mxu0  ;;  %v4735_v5 = vld [vmem:[%s5921_s2 + $0x178] sm:$0xff]   ;;  %v4740_v10 = vld [vmem:[%s5921_s2 + $0x2c0] sm:$0xff]   ;;  %v4744_v14 = vld [vmem:[%s5921_s2 + $0x2c8] sm:$0xff]  }
 0xc6a   :  { %v1460_v26 = vadd.f32 %v1459_v22, %v975_v59  ;;  %v1503_v28 = vadd.f32 %v1502_v4, %v5365_v52  ;;  %v1461_v6 = vpop.f32.mrb[37].mxu1  ;;  %v1504_v29 = vpop.f32.mrb[41].mxu0  ;;  %4260 = vmatprep.subr.bf16.mxu1 %v4723_v11  ;;  %4282 = vmatprep.subr.bf16.mxu0 %v4724_v13  ;;  %v4736_v49 = vld [vmem:[%s5921_s2 + $0x1f8] sm:$0xff]   ;;  %v4741_v17 = vld [vmem:[%s5921_s2 + $0x200] sm:$0xff]   ;;  %v4743_v13 = vld [vmem:[%s5921_s2 + $0x248] sm:$0xff]  }
 0xc6b   :  { %v1462_v34 = vadd.f32 %v1461_v6, %v979_v60  ;;  %v1505_v35 = vadd.f32 %v1504_v29, %v987_v12  ;;  %v1463_v36 = vpop.f32.mrb[38].mxu1  ;;  %v1506_v38 = vpop.f32.mrb[42].mxu0  ;;  %v4742_v11 = vld [vmem:[%s5921_s2 + $0x280] sm:$0xff]   ;;  %v4745_v19 = vld [vmem:[%s5921_s2 + $0x208] sm:$0xff]   ;;  %v4749_v16 = vld [vmem:[%s5921_s2 + $0x210] sm:$0xff]  }
 0xc6c   :  { %v1464_v39 = vadd.f32 %v1463_v36, %v975_v59  ;;  %v1507_v40 = vadd.f32 %v1506_v38, %v5365_v52  ;;  %v1465_v41 = vpop.f32.mrb[39].mxu1  ;;  %v1508_v42 = vpop.f32.mrb[43].mxu0  ;;  %v1523_v47 = vmax.f32 %v1460_v26, 0.0  ;;  %v1525_v48 = vmax.f32 %v1503_v28, 0.0  ;;  %v4731_v52 = vld [vmem:[%s5921_s2 + $0x170] sm:$0xff]   ;;  %v4746_v20 = vld [vmem:[%s5921_s2 + $0x288] sm:$0xff]  }
 0xc6d   :  { %v1466_v43 = vadd.f32 %v1465_v41, %v979_v60  ;;  %v1509_v44 = vadd.f32 %v1508_v42, %v987_v12  ;;  %4261 = vmatpush3.bf16.msra.mxu1 %v4725_v24  ;;  %4283 = vmatpush3.bf16.msra.mxu0 %v4726_v25  ;;  %v1524_v15 = vmax.f32 %v1462_v34, 0.0  ;;  %v1526_v54 = vmax.f32 %v1505_v35, 0.0  ;;  %v4737_v12 = vld [vmem:[%s5921_s2 + $0x138] sm:$0xff]   ;;  %v4755_v25 = vld [vmem:[%s5921_s2 + $0x260] sm:$0xff]   ;;  %v4759_v29 = vld [vmem:[%s5921_s2 + $0x268] sm:$0xff]  }
 0xc6e   :  { %v1539_v50 = vmax.f32 %v1464_v39, 0.0  ;;  %v1541_v51 = vmax.f32 %v1507_v40, 0.0  ;;  %4262 = vmatprep.subr.bf16.mxu1 %v4727_v31  ;;  %4284 = vmatprep.subr.bf16.mxu0 %v4728_v33  ;;  %v4752_v22 = vld [vmem:[%s5921_s2 + $0x2d8] sm:$0xff]   ;;  %v4756_v26 = vld [vmem:[%s5921_s2 + $0x2e0] sm:$0xff]   ;;  %v4760_v31 = vld [vmem:[%s5921_s2 + $0x2e8] sm:$0xff]  }
 0xc6f   :  { %v1540_v55 = vmax.f32 %v1466_v43, 0.0  ;;  %v1542_v56 = vmax.f32 %v1509_v44, 0.0  ;;  %v4753_v4 = vld [vmem:[%s5921_s2 + $0x218] sm:$0xff]   ;;  %v4757_v28 = vld [vmem:[%s5921_s2 + $0x220] sm:$0xff]   ;;  %v4761_v33 = vld [vmem:[%s5921_s2 + $0x228] sm:$0xff]  }
 0xc70   :  { %v5490_v57 = vpack.c.bf16 %v1539_v50, %v1523_v47  ;;  %v5492_v58 = vpack.c.bf16 %v1541_v51, %v1525_v48  ;;  %v4754_v24 = vld [vmem:[%s5921_s2 + $0x298] sm:$0xff]   ;;  %v4758_v6 = vld [vmem:[%s5921_s2 + $0x2a0] sm:$0xff]   ;;  %v4762_v34 = vld [vmem:[%s5921_s2 + $0x2a8] sm:$0xff]  }
 0xc71   :  { %v5494_v59 = vpack.c.bf16 %v1540_v55, %v1524_v15  ;;  %v5496_v60 = vpack.c.bf16 %v1542_v56, %v1526_v54  ;;  %4263 = vmatpush3.bf16.msra.mxu1 %v4729_v45  ;;  %4285 = vmatpush3.bf16.msra.mxu0 %v4730_v46  ;;  %v4763_v35 = vld [vmem:[%s5921_s2 + $0x270] sm:$0xff]   ;;  %v4767_v40 = vld [vmem:[%s5921_s2 + $0x278] sm:$0xff]   ;;  %v4771_v44 = vld [vmem:[%s5921_s2 + $0x340] sm:$0xff]  }
 0xc72   :  { %4264 = vmatprep.subr.bf16.mxu1 %v4731_v52  ;;  %4286 = vmatprep.subr.bf16.mxu0 %v4732_v53  ;;  %v4764_v36 = vld [vmem:[%s5921_s2 + $0x2f0] sm:$0xff]   ;;  %v4768_v41 = vld [vmem:[%s5921_s2 + $0x2f8] sm:$0xff]   ;;  %v4772_v45 = vld [vmem:[%s5921_s2 + $0x3c0] sm:$0xff]  }
 0xc73   :  { %v4765_v38 = vld [vmem:[%s5921_s2 + $0x230] sm:$0xff]   ;;  %v4769_v42 = vld [vmem:[%s5921_s2 + $0x238] sm:$0xff]   ;;  %v4773_v46 = vld [vmem:[%s5921_s2 + $0x300] sm:$0xff]  }
 0xc74   :  { %v4766_v39 = vld [vmem:[%s5921_s2 + $0x2b0] sm:$0xff]   ;;  %v4770_v43 = vld [vmem:[%s5921_s2 + $0x2b8] sm:$0xff]   ;;  %v4774_v47 = vld [vmem:[%s5921_s2 + $0x380] sm:$0xff]  }
 0xc75   :  { %4265 = vmatpush3.bf16.msra.mxu1 %v4733_v61  ;;  %4287 = vmatpush3.bf16.msra.mxu0 %v4734_v62  ;;  %v4775_v48 = vld [vmem:[%s5921_s2 + $0x348] sm:$0xff]   ;;  %v4781_v53 = vld [vmem:[%s5921_s2 + $0x310] sm:$0xff]   ;;  %v4783_v54 = vld [vmem:[%s5921_s2 + $0x358] sm:$0xff]  }
 0xc76   :  { %4266 = vmatprep.subr.bf16.mxu1 %v4735_v5  ;;  %4288 = vmatprep.subr.bf16.mxu0 %v4736_v49  ;;  %v4776_v50 = vld [vmem:[%s5921_s2 + $0x3c8] sm:$0xff]   ;;  %v4782_v15 = vld [vmem:[%s5921_s2 + $0x390] sm:$0xff]   ;;  %v4784_v55 = vld [vmem:[%s5921_s2 + $0x3d8] sm:$0xff]  }
 0xc77   :  { %v4777_v51 = vld [vmem:[%s5921_s2 + $0x308] sm:$0xff]   ;;  %v4785_v56 = vld [vmem:[%s5921_s2 + $0x318] sm:$0xff]   ;;  %v4788_v61 = vld [vmem:[%s5921_s2 + $0x3e0] sm:$0xff]  }
 0xc78   :  { %v4778_v52 = vld [vmem:[%s5921_s2 + $0x388] sm:$0xff]   ;;  %v4789_v62 = vld [vmem:[%s5921_s2 + $0x320] sm:$0xff]  }
 0xc79   :  { %4267 = vmatpush3.bf16.msra.mxu1 %v4737_v12  ;;  %4289 = vmatpush3.bf16.msra.mxu0 %v4738_v8  ;;  %v4790_v5 = vld [vmem:[%s5921_s2 + $0x3a0] sm:$0xff]   ;;  %v4791_v49 = vld [vmem:[%s5921_s2 + $0x368] sm:$0xff]  }
 0xc7a   :  { %4296 = vmatprep.subr.bf16.mxu1 %v4739_v9  ;;  %4318 = vmatprep.subr.bf16.mxu0 %v4740_v10  ;;  %v4792_v12 = vld [vmem:[%s5921_s2 + $0x3e8] sm:$0xff]   ;;  %v4795_v10 = vld [vmem:[%s5921_s2 + $0x370] sm:$0xff]  }
 0xc7b   :  { %v4793_v8 = vld [vmem:[%s5921_s2 + $0x328] sm:$0xff]  }
 0xc7c   :  { %2705 = vmatmul.mubr.bf16.vlgmr.msra.gmra.mrb[44].mxu1 %v5419_v37  ;;  %2746 = vmatmul.mubr.bf16.vlgmr.msra.gmra.mrb[48].mxu0 %v5421_v7  ;;  %v4747_v37 = vld [vmem:[%s5921_s2 + $0x250] sm:$0xff]   ;;  %v4794_v9 = vld [vmem:[%s5921_s2 + $0x3a8] sm:$0xff]  }
 0xc7d   :  { %4297 = vmatpush3.bf16.msra.mxu1 %v4741_v17  ;;  %2786 = vmatprep.mubr.bf16.mxu1 %v5460_v18  ;;  %v4748_v7 = vld [vmem:[%s5921_s2 + $0x2d0] sm:$0xff]  }
 0xc7e   :  { %4319 = vmatpush3.bf16.msra.mxu0 %v4742_v11  ;;  %2827 = vmatprep.mubr.bf16.mxu0 %v5462_v3  ;;  %v4750_v18 = vld [vmem:[%s5921_s2 + $0x290] sm:$0xff]   ;;  %v4751_v3 = vld [vmem:[%s5921_s2 + $0x258] sm:$0xff]  }
 0xc7f   :  { %4298 = vmatprep.subr.bf16.mxu1 %v4743_v13  ;;  %4320 = vmatprep.subr.bf16.mxu0 %v4744_v14  ;;  %v4796_v17 = vld [vmem:[%s5921_s2 + $0x3f0] sm:$0xff]   ;;  %v4799_v14 = vld [vmem:[%s5921_s2 + $0x378] sm:$0xff]  }
 0xc80   :  { %v4797_v11 = vld [vmem:[%s5921_s2 + $0x330] sm:$0xff]  }
 0xc81   :  { %4299 = vmatpush3.bf16.msra.mxu1 %v4745_v19  ;;  %v4798_v13 = vld [vmem:[%s5921_s2 + $0x3b0] sm:$0xff]   ;;  %v4800_v19 = vld [vmem:[%s5921_s2 + $0x3f8] sm:$0xff]  }
 0xc82   :  { %4321 = vmatpush3.bf16.msra.mxu0 %v4746_v20  ;;  %4300 = vmatprep.subr.bf16.mxu1 %v4747_v37  ;;  %v4801_v20 = vld [vmem:[%s5921_s2 + $0x338] sm:$0xff]  }
 0xc83   :  { %4322 = vmatprep.subr.bf16.mxu0 %v4748_v7  ;;  %v4802_v37 = vld [vmem:[%s5921_s2 + $0x3b8] sm:$0xff]  }
 0xc85   :  { %4301 = vmatpush3.bf16.msra.mxu1 %v4749_v16 }
 0xc86   :  { %4323 = vmatpush3.bf16.msra.mxu0 %v4750_v18  ;;  %4302 = vmatprep.subr.bf16.mxu1 %v4751_v3  ;;  %v4026_v18 = vld [vmem:[%s5923_s4 + $0x14] ss:$0 sm:$0xff] }
 0xc87   :  { %4324 = vmatprep.subr.bf16.mxu0 %v4752_v22 }
 0xc89   :  { %4303 = vmatpush3.bf16.msra.mxu1 %v4753_v4 }
 0xc8a   :  { %4325 = vmatpush3.bf16.msra.mxu0 %v4754_v24  ;;  %4304 = vmatprep.subr.bf16.mxu1 %v4755_v25 }
 0xc8b   :  { %4326 = vmatprep.subr.bf16.mxu0 %v4756_v26 }
 0xc8d   :  { %4305 = vmatpush3.bf16.msra.mxu1 %v4757_v28 }
 0xc8e   :  { %4327 = vmatpush3.bf16.msra.mxu0 %v4758_v6  ;;  %4306 = vmatprep.subr.bf16.mxu1 %v4759_v29 }
 0xc8f   :  { %4328 = vmatprep.subr.bf16.mxu0 %v4760_v31 }
 0xc91   :  { %4307 = vmatpush3.bf16.msra.mxu1 %v4761_v33 }
 0xc92   :  { %4329 = vmatpush3.bf16.msra.mxu0 %v4762_v34  ;;  %4308 = vmatprep.subr.bf16.mxu1 %v4763_v35 }
 0xc93   :  { %4330 = vmatprep.subr.bf16.mxu0 %v4764_v36 }
 0xc95   :  { %4309 = vmatpush3.bf16.msra.mxu1 %v4765_v38 }
 0xc96   :  { %4331 = vmatpush3.bf16.msra.mxu0 %v4766_v39  ;;  %4310 = vmatprep.subr.bf16.mxu1 %v4767_v40 }
 0xc97   :  { %4332 = vmatprep.subr.bf16.mxu0 %v4768_v41 }
 0xc99   :  { %4311 = vmatpush3.bf16.msra.mxu1 %v4769_v42 }
 0xc9a   :  { %4333 = vmatpush3.bf16.msra.mxu0 %v4770_v43  ;;  %4340 = vmatprep.subr.bf16.mxu1 %v4771_v44 }
 0xc9b   :  { %4362 = vmatprep.subr.bf16.mxu0 %v4772_v45 }
 0xc9c   :  { %2787 = vmatmul.mubr.bf16.vlgmr.msra.gmra.mrb[48].mxu1 %v5456_v21  ;;  %v4779_v21 = vld [vmem:[%s5921_s2 + $0x350] sm:$0xff]  }
 0xc9d   :  { %2828 = vmatmul.mubr.bf16.vlgmr.msra.gmra.mrb[52].mxu0 %v5458_v2  ;;  %4341 = vmatpush3.bf16.msra.mxu1 %v4773_v46  ;;  %v4780_v2 = vld [vmem:[%s5921_s2 + $0x3d0] sm:$0xff]  }
 0xc9e   :  { %2868 = vmatprep.mubr.bf16.mxu1 %v5494_v59  ;;  %4363 = vmatpush3.bf16.msra.mxu0 %v4774_v47  ;;  %v4786_v59 = vld [vmem:[%s5921_s2 + $0x398] sm:$0xff]  }
 0xc9f   :  { %2909 = vmatprep.mubr.bf16.mxu0 %v5496_v60  ;;  %4342 = vmatprep.subr.bf16.mxu1 %v4775_v48  ;;  %v4787_v60 = vld [vmem:[%s5921_s2 + $0x360] sm:$0xff]  }
 0xca0   :  { %4364 = vmatprep.subr.bf16.mxu0 %v4776_v50 }
 0xca1   :  { %4343 = vmatpush3.bf16.msra.mxu1 %v4777_v51 }
 0xca2   :  { %4365 = vmatpush3.bf16.msra.mxu0 %v4778_v52  ;;  %4344 = vmatprep.subr.bf16.mxu1 %v4779_v21 }
 0xca3   :  { %4366 = vmatprep.subr.bf16.mxu0 %v4780_v2 }
 0xca5   :  { %4345 = vmatpush3.bf16.msra.mxu1 %v4781_v53 }
 0xca6   :  { %4367 = vmatpush3.bf16.msra.mxu0 %v4782_v15  ;;  %4346 = vmatprep.subr.bf16.mxu1 %v4783_v54 }
 0xca7   :  { %4368 = vmatprep.subr.bf16.mxu0 %v4784_v55 }
 0xca9   :  { %4347 = vmatpush3.bf16.msra.mxu1 %v4785_v56 }
 0xcaa   :  { %4369 = vmatpush3.bf16.msra.mxu0 %v4786_v59  ;;  %4348 = vmatprep.subr.bf16.mxu1 %v4787_v60 }
 0xcab   :  { %4370 = vmatprep.subr.bf16.mxu0 %v4788_v61 }
 0xcad   :  { %4349 = vmatpush3.bf16.msra.mxu1 %v4789_v62 }
 0xcae   :  { %4371 = vmatpush3.bf16.msra.mxu0 %v4790_v5  ;;  %4350 = vmatprep.subr.bf16.mxu1 %v4791_v49 }
 0xcaf   :  { %4372 = vmatprep.subr.bf16.mxu0 %v4792_v12 }
 0xcb1   :  { %4351 = vmatpush3.bf16.msra.mxu1 %v4793_v8 }
 0xcb2   :  { %4373 = vmatpush3.bf16.msra.mxu0 %v4794_v9  ;;  %4352 = vmatprep.subr.bf16.mxu1 %v4795_v10 }
 0xcb3   :  { %4374 = vmatprep.subr.bf16.mxu0 %v4796_v17 }
 0xcb5   :  { %4353 = vmatpush3.bf16.msra.mxu1 %v4797_v11 }
 0xcb6   :  { %4375 = vmatpush3.bf16.msra.mxu0 %v4798_v13  ;;  %4354 = vmatprep.subr.bf16.mxu1 %v4799_v14 }
 0xcb7   :  { %4376 = vmatprep.subr.bf16.mxu0 %v4800_v19 }
 0xcb9   :  { %4355 = vmatpush3.bf16.msra.mxu1 %v4801_v20 }
 0xcba   :  { %4377 = vmatpush3.bf16.msra.mxu0 %v4802_v37  ;;  %4500 = vmatprep.subr.bf16.mxu1 %v4905_v0 }
 0xcbb   :  { %4508 = vmatprep.subr.bf16.mxu0 %v4905_v0 }
 0xcbc   :  { %2869 = vmatmul.mubr.bf16.vlgmr.msra.gmra.mrb[52].mxu1 %v5490_v57 }
 0xcbd   :  { %2910 = vmatmul.mubr.bf16.vlgmr.msra.gmra.mrb[56].mxu0 %v5492_v58  ;;  %4504 = vmatprep.mubr.msk.bf16.mxu1 %vm4906_vm0, %v4905_v0 }
 0xcbe   :  { %4510 = vmatprep.mubr.msk.bf16.mxu0 %vm4906_vm0, %v4905_v0 }
 0xd2f   :  { %v4224_v7 = vpop.f32.mrb[40].mxu1  ;;  %v4246_v16 = vpop.f32.mrb[44].mxu0 }
 0xd30   :  { %v4225_v3 = vpop.f32.mrb[41].mxu1  ;;  %v4247_v22 = vpop.f32.mrb[45].mxu0 }
 0xd31   :  { %v4226_v4 = vadd.f32 %v4225_v3, %v4224_v7  ;;  %v4248_v24 = vadd.f32 %v4247_v22, %v4246_v16  ;;  %v4227_v25 = vpop.f32.mrb[42].mxu1  ;;  %v4249_v57 = vpop.f32.mrb[46].mxu0 }
 0xd32   :  { %v4228_v26 = vpop.f32.mrb[43].mxu1  ;;  %v4250_v58 = vpop.f32.mrb[47].mxu0 }
 0xd33   :  { %v2625_v28 = vadd.f32 %v4226_v4, %v4026_v18  ;;  %v4229_v6 = vadd.f32 %v4228_v26, %v4227_v25  ;;  %v4251_v29 = vadd.f32 %v4250_v58, %v4249_v57 }
 0xd35   :  { %v2666_v31 = vadd.f32 %v4248_v24, %v2625_v28  ;;  %v2628_v33 = vadd.f32 %v4229_v6, %v4026_v18 }
 0xd37   :  { %v2669_v34 = vadd.f32 %v4251_v29, %v2628_v33 }
 0xd4f   :  { %v4268_v35 = vpop.f32.mrb[44].mxu1  ;;  %v4290_v36 = vpop.f32.mrb[48].mxu0 }
 0xd50   :  { %v4269_v38 = vpop.f32.mrb[45].mxu1  ;;  %v4291_v39 = vpop.f32.mrb[49].mxu0 }
 0xd51   :  { %v4270_v40 = vadd.f32 %v4269_v38, %v4268_v35  ;;  %v4292_v41 = vadd.f32 %v4291_v39, %v4290_v36  ;;  %v4271_v42 = vpop.f32.mrb[46].mxu1  ;;  %v4293_v43 = vpop.f32.mrb[50].mxu0 }
 0xd52   :  { %v4272_v44 = vpop.f32.mrb[47].mxu1  ;;  %v4294_v45 = vpop.f32.mrb[51].mxu0 }
 0xd53   :  { %v2707_v46 = vadd.f32 %v4270_v40, %v2666_v31  ;;  %v4273_v47 = vadd.f32 %v4272_v44, %v4271_v42  ;;  %v4295_v48 = vadd.f32 %v4294_v45, %v4293_v43  ;;  %v4804_v40 = vld [vmem:[%s5920_s1 + $0xf0] ss:$84 sps:$4 sm:$0xff]  }
 0xd55   :  { %v2748_v50 = vadd.f32 %v4292_v41, %v2707_v46  ;;  %v2710_v51 = vadd.f32 %v4273_v47, %v2669_v34 }
 0xd57   :  { %v2751_v52 = vadd.f32 %v4295_v48, %v2710_v51 }
 0xd6f   :  { %v4312_v21 = vpop.f32.mrb[48].mxu1 }
 0xd70   :  { %v4334_v2 = vpop.f32.mrb[52].mxu0  ;;  %v4313_v53 = vpop.f32.mrb[49].mxu1 }
 0xd71   :  { %v4314_v15 = vadd.f32 %v4313_v53, %v4312_v21  ;;  %v4335_v54 = vpop.f32.mrb[53].mxu0  ;;  %v4315_v55 = vpop.f32.mrb[50].mxu1 }
 0xd72   :  { %v4336_v56 = vadd.f32 %v4335_v54, %v4334_v2  ;;  %v4337_v59 = vpop.f32.mrb[54].mxu0  ;;  %v4316_v60 = vpop.f32.mrb[51].mxu1  ;;  %v4156_v2 = vld [vmem:[%s5923_s4 + $0x18] ss:$0 sm:$0xff] }
 0xd73   :  { %v2789_v61 = vadd.f32 %v4314_v15, %v2748_v50  ;;  %v4317_v62 = vadd.f32 %v4316_v60, %v4315_v55  ;;  %v4338_v5 = vpop.f32.mrb[55].mxu0  ;;  %v4155_v50 = vld [vmem:[%s5923_s4 + $0x17] ss:$0 sm:$0xff] }
 0xd74   :  { %v4339_v49 = vadd.f32 %v4338_v5, %v4337_v59 }
 0xd75   :  { %v2830_v12 = vadd.f32 %v4336_v56, %v2789_v61  ;;  %v2792_v8 = vadd.f32 %v4317_v62, %v2751_v52  ;;  %v4157_v56 = vld [vmem:[%s5923_s4 + $0x2] ss:$0 sm:$0xff] }
 0xd77   :  { %v2833_v9 = vadd.f32 %v4339_v49, %v2792_v8 }
 0xd8f   :  { %v4356_v10 = vpop.f32.mrb[52].mxu1 }
 0xd90   :  { %v4378_v17 = vpop.f32.mrb[56].mxu0  ;;  %v4357_v11 = vpop.f32.mrb[53].mxu1 }
 0xd91   :  { %v4358_v13 = vadd.f32 %v4357_v11, %v4356_v10  ;;  %v4379_v14 = vpop.f32.mrb[57].mxu0  ;;  %v4359_v19 = vpop.f32.mrb[54].mxu1 }
 0xd92   :  { %v4380_v20 = vadd.f32 %v4379_v14, %v4378_v17  ;;  %v4381_v37 = vpop.f32.mrb[58].mxu0  ;;  %v4360_v7 = vpop.f32.mrb[55].mxu1 }
 0xd93   :  { %v2871_v16 = vadd.f32 %v4358_v13, %v2830_v12  ;;  %v4361_v18 = vadd.f32 %v4360_v7, %v4359_v19  ;;  %v4382_v3 = vpop.f32.mrb[59].mxu0 }
 0xd94   :  { %v4383_v22 = vadd.f32 %v4382_v3, %v4381_v37 }
 0xd95   :  { %v2912_v4 = vadd.f32 %v4380_v20, %v2871_v16  ;;  %v2874_v24 = vadd.f32 %v4361_v18, %v2833_v9 }
 0xd97   :  { %v2915_v25 = vadd.f32 %v4383_v22, %v2874_v24  ;;  %v2918_v57 = vadd.f32 %v2912_v4, %v5160_v63 }
 0xd99   :  { %v2922_v26 = vsel %vm100_vm1, %v2918_v57, 0.0  ;;  %v2919_v58 = vadd.f32 %v2915_v25, %v5162_v1  ;;  %v4803_v1 = vld [vmem:[%s5920_s1 + $0x48] ss:$84 sps:$4 sm:$0xff]  }
 0xd9a   :  { %2923 = vadd.xlane.f32.xlu1 %v2922_v26  ;;  %4501 = vmatpush3.bf16.msra.mxu1 %v4803_v1 }
 0xd9b   :  { %v2925_v28 = vsel %vm100_vm1, %v2919_v58, 0.0  ;;  %4502 = vmatprep.subr.bf16.mxu1 %v4905_v0 }
 0xd9c   :  { %2926 = vadd.xlane.f32.xlu0 %v2925_v28 }
 0xd9e   :  { %4503 = vmatpush3.bf16.msra.mxu1 %v4804_v40 }
 0xd9f   :  { %4514 = vmatprep.subr.bf16.mxu1 %v4905_v0 }
 0xe27   :  { %v2924_v6 = vpop.xlane.xlu1 %2923 }
 0xe28   :  { %v2928_v29 = vmul.f32 0.03125, %v2924_v6 }
 0xe29   :  { %v2927_v31 = vpop.xlane.xlu0 %2926 }
 0xe2a   :  { %v2930_v33 = vsub.f32 %v2918_v57, %v2928_v29  ;;  %v2929_v34 = vmul.f32 0.03125, %v2927_v31 }
 0xe2c   :  { %v2931_v35 = vsub.f32 %v2919_v58, %v2929_v34  ;;  %v2932_v36 = vmul.f32 %v2930_v33, %v2930_v33 }
 0xe2e   :  { %v2934_v38 = vsel %vm100_vm1, %v2932_v36, 0.0  ;;  %v2933_v39 = vmul.f32 %v2931_v35, %v2931_v35 }
 0xe2f   :  { %2935 = vadd.xlane.f32.xlu0 %v2934_v38 }
 0xe30   :  { %v2937_v63 = vsel %vm100_vm1, %v2933_v39, 0.0 }
 0xe33   :  { %2938 = vadd.xlane.f32.xlu0 %v2937_v63 }
 0xebc   :  { %v2936_v41 = vpop.xlane.xlu0 %2935 }
 0xebd   :  { %v2940_v42 = vmul.f32 0.03125, %v2936_v41 }
 0xebf   :  { %v2942_v43 = vadd.f32 1e-05, %v2940_v42 }
 0xec0   :  { %v2939_v44 = vpop.xlane.xlu0 %2938 }
 0xec1   :  { %4843 = vrsqrt.f32 %v2942_v43  ;;  %v2941_v45 = vmul.f32 0.03125, %v2939_v44 }
 0xec3   :  { %v2943_v46 = vadd.f32 1e-05, %v2941_v45 }
 0xec5   :  { %4845 = vrsqrt.f32 %v2943_v46 }
 0xecb   :  { %v4844_v47 = vpop.eup %4843 }
 0xecc   :  { %v2946_v48 = vmul.f32 %v4844_v47, %v2930_v33 }
 0xece   :  { %v2954_v52 = vmul.f32 %v4155_v50, %v2946_v48 }
 0xecf   :  { %v4846_v51 = vpop.eup %4845 }
 0xed0   :  { %v2947_v21 = vmul.f32 %v4846_v51, %v2931_v35  ;;  %v2962_v15 = vadd.f32 %v4156_v2, %v2954_v52 }
 0xed2   :  { %v2955_v53 = vmul.f32 %v4155_v50, %v2947_v21 }
 0xed4   :  { %v2963_v54 = vadd.f32 %v4156_v2, %v2955_v53 }
 0xed6   :  { %v2974_v55 = vpack.c.bf16 %v2963_v54, %v2962_v15 }
 0xed8   :  { %4505 = vmatmul.mubr.msk.bf16.vlgmr.msra.gmra.mrb[56].mxu1 %vm100_vm1, %v2974_v55 }
 0xed9   :  { %4516 = vmatprep.mubr.msk.bf16.mxu1 %vm4906_vm0, %v4905_v0 }
 0xfab   :  { %v3030_v59 = vpop.f32.mrb[56].mxu1 }
 0xfac   :  { %v3031_v60 = vadd.f32 %v4157_v56, %v3030_v59  ;;  %v4506_v61 = vpop.f32.mrb[57].mxu1 }
 0xfad   :  { %v3033_v62 = vpop.f32.mrb[58].mxu1 }
 0xfae   :  { %v3034_v5 = vadd.f32 %v4157_v56, %v3033_v62  ;;  %v4507_v49 = vpop.f32.mrb[59].mxu1  ;;  %v3037_v12 = vmul.f32 0.35355338, %v3031_v60 }
 0xfb0   :  { %v3038_v8 = vmul.f32 0.35355338, %v3034_v5  ;;  %v5753_v9 = vpack.c.bf16 %v3034_v5, %v3031_v60 }
 0xfb2   :  { %v5755_v10 = vpack.c.bf16 %v3038_v8, %v3037_v12  ;;  %3042 = vrot.lane.b32.xlu0 %v5753_v9, %s4907_s28 }
 0xfb4   :  { %3163 = vrot.lane.b32.xlu1 %v5755_v10, %s4908_s29 }
 0xfb6   :  { %3165 = vrot.lane.b32.xlu0 %v5753_v9, %s4909_s30 }
0x1024   :  { %v3043_v17 = vpop.permute.xlu0 %3042 }
0x1025   :  { %v3048_v11 = vsel %vm152_vm2, %v3043_v17, 0  ;;  %v2969_v17 = vld [vmem:[%s5920_s1 + $0x4c] sm:$0xf] }
0x1026   :  { %4509 = vmatpush3.bf16.xpose.msra.mxu0 %v3048_v11  ;;  %v3164_v19 = vpop.permute.xlu1 %3163  ;;  %v3336_v11 = vsel %vm398_vm6, %v2969_v17, 0 }
0x1027   :  { %4520 = vmatprep.subr.bf16.mxu0 %v4905_v0 }
0x1028   :  { %v3166_v13 = vpop.permute.xlu0 %3165 }
0x1029   :  { %v3171_v14 = vsel %vm152_vm2, %v3166_v13, 0  ;;  %v2970_v13 = vld [vmem:[%s5920_s1 + $0xa0] sm:$0xf] }
0x102d   :  { %4511 = vmatmul.mubr.msk.bf16.vlgmr.msra.gmra.mrb[60].mxu0 %vm152_vm2, %v5755_v10 }
0x102e   :  { %4521 = vmatpush3.bf16.xpose.msra.mxu0 %v3171_v14  ;;  %4522 = vmatprep.mubr.msk.bf16.mxu0 %vm4906_vm0, %v4905_v0  ;;  %v3289_v14 = vsel %vm398_vm6, %v2970_v13, 0 }
0x102f   :  { %4532 = vmatprep.subr.bf16.mxu0 %v4905_v0 }
0x1035   :  { %4523 = vmatmul.mubr.msk.bf16.vlgmr.msra.gmra.mrb[64].mxu0 %vm152_vm2, %v3164_v19 }
0x1036   :  { %4534 = vmatprep.mubr.msk.bf16.mxu0 %vm4906_vm0, %v4905_v0  ;;  %4533 = vmatpush3.bf16.msra.mxu0 %v3289_v14 }
0x1037   :  { %4544 = vmatprep.subr.bf16.mxu0 %v4905_v0 }
0x1100   :  { %v3084_v20 = vpop.f32.mrb[60].mxu0 }
0x1101   :  { %v3085_v37 = vadd.f32 %v3084_v20, %v5007_v30  ;;  %v4512_v7 = vpop.f32.mrb[61].mxu0 }
0x1102   :  { %v3087_v16 = vpop.f32.mrb[62].mxu0 }
0x1103   :  { %v3088_v18 = vadd.f32 %v3087_v16, %v5009_v32  ;;  %v4513_v3 = vpop.f32.mrb[63].mxu0  ;;  %v3091_v22 = vsel %vm200_vm5, %v3085_v37, -inf }
0x1104   :  { %3092 = vmax.xlane.f32.xlu0 %v3091_v22 }
0x1105   :  { %v3094_v4 = vsel %vm200_vm5, %v3088_v18, -inf }
0x1106   :  { %3095 = vmax.xlane.f32.xlu1 %v3094_v4 }
0x1108   :  { %v3207_v24 = vpop.f32.mrb[64].mxu0 }
0x1109   :  { %v3208_v25 = vadd.f32 %v3207_v24, %v5007_v30  ;;  %v4524_v57 = vpop.f32.mrb[65].mxu0 }
0x110a   :  { %v3210_v26 = vpop.f32.mrb[66].mxu0 }
0x110b   :  { %v3211_v58 = vadd.f32 %v3210_v26, %v5009_v32  ;;  %v4525_v28 = vpop.f32.mrb[67].mxu0  ;;  %v3214_v6 = vsel %vm200_vm5, %v3208_v25, -inf }
0x110c   :  { %3215 = vmax.xlane.f32.xlu0 %v3214_v6 }
0x110d   :  { %v3217_v29 = vsel %vm200_vm5, %v3211_v58, -inf }
0x1110   :  { %3218 = vmax.xlane.f32.xlu0 %v3217_v29 }
0x1191   :  { %v3093_v31 = vpop.xlane.xlu0 %3092 }
0x1192   :  { %v3097_v33 = vsub.f32 %v3085_v37, %v3093_v31 }
0x1193   :  { %v3096_v34 = vpop.xlane.xlu1 %3095 }
0x1194   :  { %v3099_v35 = vmul.f32 1.442695, %v3097_v33  ;;  %v3098_v36 = vsub.f32 %v3088_v18, %v3096_v34 }
0x1196   :  { %4847 = vpow2.f32 %v3099_v35  ;;  %v3101_v38 = vmul.f32 1.442695, %v3098_v36 }
0x1198   :  { %4849 = vpow2.f32 %v3101_v38 }
0x1199   :  { %v3216_v39 = vpop.xlane.xlu0 %3215 }
0x119a   :  { %v3220_v63 = vsub.f32 %v3208_v25, %v3216_v39 }
0x119c   :  { %v3222_v1 = vmul.f32 1.442695, %v3220_v63 }
0x119d   :  { %v3219_v40 = vpop.xlane.xlu0 %3218 }
0x119e   :  { %4851 = vpow2.f32 %v3222_v1  ;;  %v3221_v41 = vsub.f32 %v3211_v58, %v3219_v40 }
0x11a0   :  { %v4848_v42 = vpop.eup %4847  ;;  %v3224_v43 = vmul.f32 1.442695, %v3221_v41 }
0x11a1   :  { %v3103_v44 = vsel %vm200_vm5, %v4848_v42, 0.0 }
0x11a2   :  { %v4850_v45 = vpop.eup %4849  ;;  %4853 = vpow2.f32 %v3224_v43  ;;  %3104 = vadd.xlane.f32.xlu0 %v3103_v44 }
0x11a3   :  { %v3106_v46 = vsel %vm200_vm5, %v4850_v45, 0.0 }
0x11a6   :  { %3107 = vadd.xlane.f32.xlu0 %v3106_v46 }
0x11a8   :  { %v4852_v47 = vpop.eup %4851 }
0x11a9   :  { %v3226_v48 = vsel %vm200_vm5, %v4852_v47, 0.0 }
0x11aa   :  { %3227 = vadd.xlane.f32.xlu0 %v3226_v48 }
0x11ac   :  { %v4854_v50 = vpop.eup %4853 }
0x11ad   :  { %v3229_v51 = vsel %vm200_vm5, %v4854_v50, 0.0 }
0x11ae   :  { %3230 = vadd.xlane.f32.xlu1 %v3229_v51 }
0x11bf   :  { %3237 = vrot.lane.b32.xlu1 %v5753_v9, %s4911_s6 }
0x11c0   :  { %3114 = vrot.lane.b32.xlu0 %v5753_v9, %s4912_s7 }
0x11c3   :  { %3381 = vrot.lane.b32.xlu1 %v5753_v9, %s4913_s8 }
0x11c4   :  { %3379 = vrot.lane.b32.xlu0 %v5755_v10, %s4914_s9 }
0x122f   :  { %v3105_v52 = vpop.xlane.xlu0 %3104 }
0x1230   :  { %4855 = vrcp.f32 %v3105_v52 }
0x1233   :  { %v3108_v21 = vpop.xlane.xlu0 %3107 }
0x1234   :  { %4857 = vrcp.f32 %v3108_v21 }
0x1237   :  { %v3228_v2 = vpop.xlane.xlu0 %3227 }
0x1238   :  { %4859 = vrcp.f32 %v3228_v2 }
0x123a   :  { %v4856_v54 = vpop.eup %4855 }
0x123b   :  { %v3231_v53 = vpop.xlane.xlu1 %3230  ;;  %v3115_v15 = vpop.permute.xlu0 %3114  ;;  %v3111_v56 = vmul.f32 %v4856_v54, %v4848_v42 }
0x123c   :  { %4861 = vrcp.f32 %v3231_v53  ;;  %4515 = vmatpush3.bf16.msra.mxu1 %v3115_v15 }
0x123d   :  { %4526 = vmatprep.subr.bf16.mxu1 %v4905_v0 }
0x123e   :  { %v4858_v55 = vpop.eup %4857 }
0x123f   :  { %v3112_v59 = vmul.f32 %v4858_v55, %v4850_v45  ;;  %v3238_v61 = vpop.permute.xlu1 %3237  ;;  %v3380_v26 = vpop.permute.xlu0 %3379 }
0x1241   :  { %v3113_v60 = vpack.c.bf16 %v3112_v59, %v3111_v56 }
0x1242   :  { %v4860_v62 = vpop.eup %4859 }
0x1243   :  { %4517 = vmatmul.mubr.msk.bf16.vlgmr.msra.gmra.mrb[60].mxu1 %vm200_vm5, %v3113_v60  ;;  %v3234_v49 = vmul.f32 %v4860_v62, %v4852_v47  ;;  %v3382_v22 = vpop.permute.xlu1 %3381 }
0x1244   :  { %4527 = vmatpush3.bf16.msra.mxu1 %v3238_v61  ;;  %4528 = vmatprep.mubr.msk.bf16.mxu1 %vm4906_vm0, %v4905_v0  ;;  %v3387_v57 = vsel %vm152_vm2, %v3382_v22, 0 }
0x1245   :  { %4538 = vmatprep.subr.bf16.mxu1 %v4905_v0 }
0x1246   :  { %v4862_v5 = vpop.eup %4861 }
0x1247   :  { %v3235_v12 = vmul.f32 %v4862_v5, %v4854_v50 }
0x1249   :  { %v3236_v8 = vpack.c.bf16 %v3235_v12, %v3234_v49  ;;  %v2971_v12 = vld [vmem:[%s5920_s1 + $0xf4] sm:$0xf] }
0x124b   :  { %4529 = vmatmul.mubr.msk.bf16.vlgmr.msra.gmra.mrb[64].mxu1 %vm200_vm5, %v3236_v8  ;;  %v3505_v8 = vsel %vm398_vm6, %v2971_v12, 0 }
0x124c   :  { %4540 = vmatprep.mubr.msk.bf16.mxu1 %vm4906_vm0, %v4905_v0  ;;  %4539 = vmatpush3.bf16.msra.mxu1 %v3336_v11 }
0x124d   :  { %4550 = vmatprep.subr.bf16.mxu1 %v4905_v0 }
0x1316   :  { %v3154_v19 = vpop.f32.mrb[60].mxu1 }
0x1317   :  { %v4518_v20 = vpop.f32.mrb[61].mxu1 }
0x1318   :  { %v3157_v37 = vpop.f32.mrb[62].mxu1 }
0x1319   :  { %v3161_v7 = vpack.c.bf16 %v3157_v37, %v3154_v19  ;;  %v4519_v16 = vpop.f32.mrb[63].mxu1 }
0x131b   :  { %4541 = vmatmul.mubr.msk.bf16.vlgmr.msra.gmra.mrb[68].mxu1 %vm152_vm2, %v3161_v7 }
0x131c   :  { %4552 = vmatprep.mubr.msk.bf16.mxu1 %vm4906_vm0, %v4905_v0 }
0x131e   :  { %v3277_v18 = vpop.f32.mrb[64].mxu1 }
0x131f   :  { %v4530_v3 = vpop.f32.mrb[65].mxu1 }
0x1320   :  { %v3280_v4 = vpop.f32.mrb[66].mxu1 }
0x1321   :  { %v3284_v24 = vpack.c.bf16 %v3280_v4, %v3277_v18  ;;  %v4531_v25 = vpop.f32.mrb[67].mxu1 }
0x1323   :  { %4535 = vmatmul.mubr.msk.bf16.vlgmr.msra.gmra.mrb[68].mxu0 %vm152_vm2, %v3284_v24 }
0x1324   :  { %4545 = vmatpush3.bf16.xpose.msra.mxu0 %v3387_v57  ;;  %4546 = vmatprep.mubr.msk.bf16.mxu0 %vm4906_vm0, %v4905_v0 }
0x1325   :  { %4556 = vmatprep.subr.bf16.mxu0 %v4905_v0 }
0x132b   :  { %4547 = vmatmul.mubr.msk.bf16.vlgmr.msra.gmra.mrb[72].mxu0 %vm152_vm2, %v3380_v26 }
0x132c   :  { %4558 = vmatprep.mubr.msk.bf16.mxu0 %vm4906_vm0, %v4905_v0  ;;  %4557 = vmatpush3.bf16.msra.mxu0 %v3505_v8 }
0x132d   :  { %4568 = vmatprep.subr.bf16.mxu0 %v4905_v0 }
0x13ee   :  { %v3372_v58 = vpop.f32.mrb[68].mxu1 }
0x13ef   :  { %v4542_v28 = vpop.f32.mrb[69].mxu1 }
0x13f0   :  { %v3375_v6 = vpop.f32.mrb[70].mxu1 }
0x13f1   :  { %v4543_v29 = vpop.f32.mrb[71].mxu1 }
0x13f6   :  { %v3325_v31 = vpop.f32.mrb[68].mxu0 }
0x13f7   :  { %v5823_v33 = vadd.f32 %v3372_v58, %v3325_v31  ;;  %v4536_v34 = vpop.f32.mrb[69].mxu0 }
0x13f8   :  { %v3328_v35 = vpop.f32.mrb[70].mxu0 }
0x13f9   :  { %v5825_v36 = vadd.f32 %v3375_v6, %v3328_v35  ;;  %v4537_v38 = vpop.f32.mrb[71].mxu0 }
0x13fe   :  { %v3423_v39 = vpop.f32.mrb[72].mxu0 }
0x13ff   :  { %v3424_v63 = vadd.f32 %v3423_v39, %v5007_v30  ;;  %v4548_v1 = vpop.f32.mrb[73].mxu0 }
0x1400   :  { %v3426_v40 = vpop.f32.mrb[74].mxu0 }
0x1401   :  { %v3427_v41 = vadd.f32 %v3426_v40, %v5009_v32  ;;  %v4549_v42 = vpop.f32.mrb[75].mxu0  ;;  %v3430_v43 = vsel %vm200_vm5, %v3424_v63, -inf }
0x1402   :  { %3431 = vmax.xlane.f32.xlu1 %v3430_v43 }
0x1403   :  { %v3433_v44 = vsel %vm200_vm5, %v3427_v41, -inf }
0x1404   :  { %3434 = vmax.xlane.f32.xlu0 %v3433_v44 }
0x148f   :  { %v3432_v45 = vpop.xlane.xlu1 %3431 }
0x1490   :  { %v3436_v46 = vsub.f32 %v3424_v63, %v3432_v45 }
0x1491   :  { %v3435_v47 = vpop.xlane.xlu0 %3434 }
0x1492   :  { %v3438_v48 = vmul.f32 1.442695, %v3436_v46  ;;  %v3437_v50 = vsub.f32 %v3427_v41, %v3435_v47 }
0x1494   :  { %4863 = vpow2.f32 %v3438_v48  ;;  %v3440_v51 = vmul.f32 1.442695, %v3437_v50 }
0x1496   :  { %4865 = vpow2.f32 %v3440_v51 }
0x149e   :  { %v4864_v52 = vpop.eup %4863 }
0x149f   :  { %v3442_v21 = vsel %vm200_vm5, %v4864_v52, 0.0 }
0x14a0   :  { %v4866_v2 = vpop.eup %4865  ;;  %3443 = vadd.xlane.f32.xlu0 %v3442_v21  ;;  %v4805_v21 = vld [vmem:[%s5920_s1 + $0x50] ss:$84 sps:$4 sm:$0xff]  }
0x14a1   :  { %v3445_v53 = vsel %vm200_vm5, %v4866_v2, 0.0 }
0x14a2   :  { %3446 = vadd.xlane.f32.xlu1 %v3445_v53 }
0x14b3   :  { %3552 = vrot.lane.b32.xlu1 %v5753_v9, %s4915_s14 }
0x14b6   :  { %3453 = vrot.lane.b32.xlu0 %v5753_v9, %s4916_s15 }
0x14b7   :  { %3550 = vrot.lane.b32.xlu1 %v5755_v10, %s4917_s16 }
0x152d   :  { %v3444_v15 = vpop.xlane.xlu0 %3443 }
0x152e   :  { %4867 = vrcp.f32 %v3444_v15 }
0x152f   :  { %v3447_v54 = vpop.xlane.xlu1 %3446 }
0x1530   :  { %4869 = vrcp.f32 %v3447_v54  ;;  %v4173_v54 = vld [vmem:[%s5923_s4 + $0x3] ss:$0 sm:$0xff] }
0x1531   :  { %v3454_v55 = vpop.permute.xlu0 %3453 }
0x1532   :  { %4551 = vmatpush3.bf16.msra.mxu1 %v3454_v55 }
0x1533   :  { %4562 = vmatprep.subr.bf16.mxu1 %v4905_v0  ;;  %v3553_v62 = vpop.permute.xlu1 %3552 }
0x1534   :  { %v3558_v49 = vsel %vm152_vm2, %v3553_v62, 0 }
0x1537   :  { %v3551_v10 = vpop.permute.xlu1 %3550 }
0x1538   :  { %v4868_v56 = vpop.eup %4867 }
0x1539   :  { %v3450_v60 = vmul.f32 %v4868_v56, %v4864_v52  ;;  %v4920_v52 = vmov 0.0|0.0  }
0x153a   :  { %v4870_v59 = vpop.eup %4869 }
0x153b   :  { %v3451_v61 = vmul.f32 %v4870_v59, %v4866_v2 }
0x153d   :  { %v3452_v5 = vpack.c.bf16 %v3451_v61, %v3450_v60 }
0x153f   :  { %4553 = vmatmul.mubr.msk.bf16.vlgmr.msra.gmra.mrb[72].mxu1 %vm200_vm5, %v3452_v5  ;;  %v68_v5 = vsel %vm67_vm7, 0.125, %v4905_v0 }
0x1540   :  { %4563 = vmatpush3.bf16.xpose.msra.mxu1 %v3558_v49  ;;  %4564 = vmatprep.mubr.msk.bf16.mxu1 %vm4906_vm0, %v4905_v0  ;;  %v4806_v49 = vld [vmem:[%s5920_s1 + $0xf8] ss:$84 sps:$4 sm:$0xff]  }
0x1541   :  { %4574 = vmatprep.subr.bf16.mxu1 %v4905_v0 }
0x1547   :  { %4565 = vmatmul.mubr.msk.bf16.vlgmr.msra.gmra.mrb[76].mxu1 %vm152_vm2, %v3551_v10 }
0x1548   :  { %4576 = vmatprep.mubr.msk.bf16.mxu1 %vm4906_vm0, %v4905_v0 }
0x1612   :  { %v3493_v17 = vpop.f32.mrb[72].mxu1 }
0x1613   :  { %v4554_v11 = vpop.f32.mrb[73].mxu1 }
0x1614   :  { %v3496_v13 = vpop.f32.mrb[74].mxu1 }
0x1615   :  { %v3500_v14 = vpack.c.bf16 %v3496_v13, %v3493_v17  ;;  %v4555_v19 = vpop.f32.mrb[75].mxu1  ;;  %v4606_v17 = vpack.c.bf16 %v3870_v27, %v3869_v23 }
0x1617   :  { %4559 = vmatmul.mubr.msk.bf16.vlgmr.msra.gmra.mrb[76].mxu0 %vm152_vm2, %v3500_v14 }
0x1618   :  { %4570 = vmatprep.mubr.msk.bf16.mxu0 %vm4906_vm0, %v4905_v0 }
0x161a   :  { %v3594_v20 = vpop.f32.mrb[76].mxu1 }
0x161b   :  { %v3595_v37 = vadd.f32 %v3594_v20, %v5007_v30  ;;  %v4566_v7 = vpop.f32.mrb[77].mxu1 }
0x161c   :  { %v3597_v16 = vpop.f32.mrb[78].mxu1 }
0x161d   :  { %v3598_v18 = vadd.f32 %v3597_v16, %v5009_v32  ;;  %v4567_v3 = vpop.f32.mrb[79].mxu1  ;;  %v3601_v22 = vsel %vm200_vm5, %v3595_v37, -inf }
0x161e   :  { %3602 = vmax.xlane.f32.xlu0 %v3601_v22 }
0x161f   :  { %v3604_v4 = vsel %vm200_vm5, %v3598_v18, -inf }
0x1620   :  { %3605 = vmax.xlane.f32.xlu1 %v3604_v4 }
0x1631   :  { %3624 = vrot.lane.b32.xlu1 %v5753_v9, %s4918_s19 }
0x16ab   :  { %v3603_v24 = vpop.xlane.xlu0 %3602 }
0x16ac   :  { %v3607_v25 = vsub.f32 %v3595_v37, %v3603_v24  ;;  %v4179_v37 = vld [vmem:[%s5923_s4 + $0x1a] ss:$0 sm:$0xff] }
0x16ad   :  { %v3606_v57 = vpop.xlane.xlu1 %3605 }
0x16ae   :  { %v3609_v26 = vmul.f32 1.442695, %v3607_v25  ;;  %v3608_v58 = vsub.f32 %v3598_v18, %v3606_v57 }
0x16b0   :  { %4871 = vpow2.f32 %v3609_v26  ;;  %v3611_v30 = vmul.f32 1.442695, %v3608_v58 }
0x16b1   :  { %v3625_v28 = vpop.permute.xlu1 %3624 }
0x16b2   :  { %4873 = vpow2.f32 %v3611_v30  ;;  %4569 = vmatpush3.bf16.msra.mxu0 %v3625_v28 }
0x16b3   :  { %4602 = vmatprep.subr.bf16.mxu0 %v4920_v52 }
0x16ba   :  { %v4872_v32 = vpop.eup %4871 }
0x16bb   :  { %v3613_v6 = vsel %vm200_vm5, %v4872_v32, 0.0 }
0x16bc   :  { %v4874_v29 = vpop.eup %4873  ;;  %3614 = vadd.xlane.f32.xlu0 %v3613_v6 }
0x16bd   :  { %v3616_v31 = vsel %vm200_vm5, %v4874_v29, 0.0 }
0x16c0   :  { %3617 = vadd.xlane.f32.xlu0 %v3616_v31 }
0x16ea   :  { %v3541_v34 = vpop.f32.mrb[76].mxu0 }
0x16eb   :  { %v3548_v9 = vadd.f32 %v3541_v34, %v5823_v33  ;;  %v4560_v35 = vpop.f32.mrb[77].mxu0  ;;  %v2972_v33 = vld [vmem:[%s5920_s1 + $0x148] sm:$0xf] }
0x16ec   :  { %v3544_v38 = vpop.f32.mrb[78].mxu0 }
0x16ed   :  { %v3549_v39 = vadd.f32 %v3544_v38, %v5825_v36  ;;  %v4561_v63 = vpop.f32.mrb[79].mxu0  ;;  %v3676_v36 = vsel %vm398_vm6, %v2972_v33, 0 }
0x16ee   :  { %4575 = vmatpush3.bf16.msra.mxu1 %v3676_v36 }
0x16ef   :  { %4587 = vmatprep.subr.bf16.mxu1 %v4905_v0 }
0x1749   :  { %v3615_v1 = vpop.xlane.xlu0 %3614 }
0x174a   :  { %4875 = vrcp.f32 %v3615_v1 }
0x174d   :  { %v3618_v40 = vpop.xlane.xlu0 %3617 }
0x174e   :  { %4877 = vrcp.f32 %v3618_v40 }
0x1754   :  { %v4876_v41 = vpop.eup %4875 }
0x1755   :  { %v3621_v43 = vmul.f32 %v4876_v41, %v4872_v32 }
0x1758   :  { %v4878_v42 = vpop.eup %4877 }
0x1759   :  { %v3622_v44 = vmul.f32 %v4878_v42, %v4874_v29 }
0x175b   :  { %v3623_v45 = vpack.c.bf16 %v3622_v44, %v3621_v43 }
0x175d   :  { %4571 = vmatmul.mubr.msk.bf16.vlgmr.msra.gmra.mrb[80].mxu0 %vm200_vm5, %v3623_v45 }
0x175e   :  { %4584 = vmatprep.mubr.msk.f32.mxu0 %vm4906_vm0, %v4905_v0 }
0x1830   :  { %v3664_v46 = vpop.f32.mrb[80].mxu0 }
0x1831   :  { %v4572_v47 = vpop.f32.mrb[81].mxu0 }
0x1832   :  { %v3667_v48 = vpop.f32.mrb[82].mxu0 }
0x1833   :  { %v3671_v50 = vpack.c.bf16 %v3667_v48, %v3664_v46  ;;  %v4573_v51 = vpop.f32.mrb[83].mxu0 }
0x1835   :  { %4577 = vmatmul.mubr.msk.bf16.vlgmr.msra.gmra.mrb[80].mxu1 %vm152_vm2, %v3671_v50 }
0x1836   :  { %4591 = vmatprep.mubr.msk.bf16.mxu1 %vm4906_vm0, %v4905_v0  ;;  %4588 = vmatpush3.bf16.msra.mxu1 %v4805_v21 }
0x1837   :  { %4589 = vmatprep.subr.bf16.mxu1 %v4905_v0 }
0x183a   :  { %4590 = vmatpush3.bf16.msra.mxu1 %v4806_v49 }
0x1908   :  { %v3712_v2 = vpop.f32.mrb[80].mxu1 }
0x1909   :  { %v3719_v53 = vadd.f32 %v3712_v2, %v3548_v9  ;;  %v4578_v15 = vpop.f32.mrb[81].mxu1 }
0x190a   :  { %v3715_v55 = vpop.f32.mrb[82].mxu1 }
0x190b   :  { %v3720_v56 = vadd.f32 %v3715_v55, %v3549_v39  ;;  %v4579_v59 = vpop.f32.mrb[83].mxu1  ;;  %v3727_v60 = vadd.f32 %v4173_v54, %v3719_v53 }
0x190d   :  { %v3728_v61 = vadd.f32 %v4173_v54, %v3720_v56 }
0x190f   :  { %v4603_v62 = vpack.c.bf16 %v3728_v61, %v3727_v60 }
0x1911   :  { %4604 = vmatpush3.bf16.msra.mxu0 %v4603_v62 }
0x1912   :  { %4605 = vmatprep.subr.bf16.mxu0 %v4920_v52 }
0x1914   :  { %4585 = vmatmul.mubr.msk.f32.vlgmr.msra.gmra.mrb[84].mxu0 %vm200_vm5, %v68_v5 }
0x1915   :  { %4599 = vmatprep.mubr.msk.f32.mxu0 %vm4906_vm0, %v4905_v0  ;;  %4607 = vmatpush3.bf16.msra.mxu0 %v4606_v17  ;;  %v4175_v0 = vld [vmem:[%s5923_s4 + $0x19] ss:$0 sm:$0xff] }
0x19e7   :  { %v3798_v10 = vpop.f32.mrb[84].mxu0 }
0x19e8   :  { %v3802_v12 = vpack.c.bf16 %v3798_v10, %v3798_v10  ;;  %v4586_v8 = vpop.f32.mrb[85].mxu0 }
0x19ea   :  { %4592 = vmatmul.mubr.msk.bf16.vlgmr.msra.gmra.mrb[84].mxu1 %vm100_vm1, %v3802_v12 }
0x1abd   :  { %v3863_v11 = vpop.f32.mrb[84].mxu1 }
0x1abe   :  { %v3864_v13 = vadd.f32 %v4175_v0, %v3863_v11  ;;  %v4593_v14 = vpop.f32.mrb[85].mxu1 }
0x1abf   :  { %v3866_v19 = vpop.f32.mrb[86].mxu1 }
0x1ac0   :  { %v4594_v20 = vpop.f32.mrb[87].mxu1  ;;  %4600 = vmatmul.mubr.msk.f32.vlgmr.msra.gmra.mrb[86].mxu0 %vm200_vm5, %v3864_v13 }
0x1b93   :  { %v3947_v7 = vpop.f32.mrb[86].mxu0 }
0x1b94   :  { %v3948_v16 = vadd.f32 %v4179_v37, %v3947_v7  ;;  %v4601_v18 = vpop.f32.mrb[87].mxu0 }
0x1b96   :  { %3952 = vst.msk [vmem:[#allocation2] sm:$0x3] %vm3951_vm8, %v3948_v16 }
0x1b97   :  { %4892 = shalt.err (!%p4889_p4)
}
0x1b98   :  { %s4893_s20 = scalar_lea.hbm %s5924_s5, 32 }
0x1b99   :  { %p4894_p5 = scmp.ne.s32.totalorder %s5924_s5, %s4893_s20  ;;  %p4897_p6 = scmp.lt.u32.totalorder %s4893_s20, %s5924_s5 }
0x1b9b   :  { %p4899_p7 = pnand %p4897_p6, %p4894_p5 }
0x1b9d   :  { %4902 = shalt.err (!%p4899_p7)
}
0x1b9e   :  { %3962 = dma.vmem_to_hbm [thread:$0]  %s3960_s13, 32, %s5924_s5, [#allocation3]  }
0x1b9f   :  { %4903 = dma.done.wait [#allocation3], 32  }
0x1ba0   :  { %4904 = vsyncadd [#allocation3], 4294967264 }
0x1ba1   :  { %3966 = vsyncpa [#allocation3], 1 }

</bundles_post_ra>
